<compile_context>
chip_gen: v7x
topology: tpu7x:2x2x1
jax: 0.10.0
libtpu: 0.0.40
codegen_flags: <defaults>
</compile_context>

<pallas_src>
import functools

import jax
import jax.numpy as jnp
from jax.experimental import pallas as pl
from jax.experimental.pallas import tpu as pltpu

# ----------------- scaled-down synthetic BERT config -----------------
HIDDEN = 64          # embedding_dim (768 in the real module, scaled down)
N_HEADS = 4
HEAD_DIM = HIDDEN // N_HEADS
INTERMEDIATE = 128
N_LAYERS = 2
MAX_POS = 16
VOCAB = 30
OUT_SLOT = 10
OUT_INT = 5
HEAD_PAD = 128       # slot+intent head columns padded to a full 128-lane store
LN_EPS = 1e-12


# ----------------------------- fused Pallas kernel -----------------------------
def _fused_bert_kernel(emb_ref, maskadd_ref,
                       emb_g_ref, emb_b_ref,
                       wqkv_ref, bqkv_ref,
                       wo_ref, bo_ref,
                       ln1_g_ref, ln1_b_ref,
                       w1_ref, b1_ref,
                       w2_ref, b2_ref,
                       ln2_g_ref, ln2_b_ref,
                       w_head_ref, b_head_ref,
                       out_ref, *, batch, seq):
    f32 = jnp.float32
    bf16 = jnp.bfloat16

    def layer_norm(x, g, b):
        mean = jnp.mean(x, axis=-1, keepdims=True)
        var = jnp.mean((x - mean) * (x - mean), axis=-1, keepdims=True)
        return (x - mean) * jax.lax.rsqrt(var + LN_EPS) * g + b

    def mm(x, w_bf16):
        # bf16 MXU operands, f32 accumulation.
        return jnp.dot(x.astype(bf16), w_bf16, preferred_element_type=f32)

    def gelu(y):
        # TODO(synk): HF BERT uses erf-based GELU; tanh approximation used here.
        return 0.5 * y * (1.0 + jnp.tanh(0.7978845608028654 *
                                         (y + 0.044715 * y * y * y)))

    mask_add = maskadd_ref[...]            # (B*nH, S, S) additive key mask (f32)

    # --- embedding LayerNorm (embedding dropout = identity in eval) ---
    h = layer_norm(emb_ref[...].astype(f32), emb_g_ref[...], emb_b_ref[...])

    for l in range(N_LAYERS):
        # fused Q|K|V projection: (B*S, 3H) lane-dense output.
        # Q columns / bias were pre-scaled by 1/sqrt(head_dim) in the wrapper.
        qkv = mm(h, wqkv_ref[l]) + bqkv_ref[l]                     # (B*S, 3H) f32

        # gather (B*nH, S, Dh) operands for ONE batched score / context matmul
        q_l, k_l, v_l = [], [], []
        for b in range(batch):
            rows = qkv[b * seq:(b + 1) * seq]                      # (S, 3H)
            for hh in range(N_HEADS):
                c0 = hh * HEAD_DIM
                q_l.append(rows[:, c0:c0 + HEAD_DIM])
                k_l.append(rows[:, HIDDEN + c0:HIDDEN + c0 + HEAD_DIM])
                v_l.append(rows[:, 2 * HIDDEN + c0:2 * HIDDEN + c0 + HEAD_DIM])
        q_all = jnp.stack(q_l).astype(bf16)                        # (B*nH, S, Dh)
        k_all = jnp.stack(k_l).astype(bf16)
        v_all = jnp.stack(v_l).astype(bf16)

        # batched attention over all (batch, head) pairs at once
        s = jnp.einsum('nqd,nkd->nqk', q_all, k_all,
                       preferred_element_type=f32) + mask_add      # (B*nH, S, S)
        s = s - jnp.max(s, axis=-1, keepdims=True)
        p = jnp.exp(s)
        p = p * pl.reciprocal(jnp.sum(p, axis=-1, keepdims=True), approx=True)
        ctx_all = jnp.einsum('nqk,nkd->nqd', p.astype(bf16), v_all,
                             preferred_element_type=f32)           # (B*nH, S, Dh)

        # reassemble context: heads -> lanes, batches -> sublanes
        ctx = jnp.concatenate(
            [jnp.concatenate([ctx_all[b * N_HEADS + hh] for hh in range(N_HEADS)],
                             axis=-1)
             for b in range(batch)], axis=0)                       # (B*S, H)

        attn_out = mm(ctx, wo_ref[l]) + bo_ref[l]
        h = layer_norm(attn_out + h, ln1_g_ref[l], ln1_b_ref[l])

        ffn = gelu(mm(h, w1_ref[l]) + b1_ref[l])
        ffn = mm(ffn, w2_ref[l]) + b2_ref[l]
        h = layer_norm(ffn + h, ln2_g_ref[l], ln2_b_ref[l])

    # final dropout = identity (eval); fused slot+intent head, 128-lane output
    out_ref[...] = (mm(h, w_head_ref[...]) + b_head_ref[...]).astype(out_ref.dtype)


def _full_spec(arr):
    nd = arr.ndim
    return pl.BlockSpec(arr.shape, lambda i, _n=nd: (0,) * _n)


# ----------------------------- parameter init -----------------------------
def init_params(key):
    n_keys = 8 + N_LAYERS * 16
    keys = iter(jax.random.split(key, n_keys))

    def nrm(shape, std=0.02):
        return (std * jax.random.normal(next(keys), shape)).astype(jnp.float32)

    params = {
        "word_emb": nrm((VOCAB, HIDDEN)),
        "pos_emb": nrm((MAX_POS, HIDDEN)),
        "type_emb": nrm((2, HIDDEN)),
        "emb_ln_g": jnp.ones((HIDDEN,), jnp.float32),
        "emb_ln_b": jnp.zeros((HIDDEN,), jnp.float32),
        "layers": [],
        "w_slot": nrm((HIDDEN, OUT_SLOT)),
        "b_slot": jnp.zeros((OUT_SLOT,), jnp.float32),
        "w_int": nrm((HIDDEN, OUT_INT)),
        "b_int": jnp.zeros((OUT_INT,), jnp.float32),
    }
    for _ in range(N_LAYERS):
        params["layers"].append({
            "wq": nrm((HIDDEN, HIDDEN)), "bq": jnp.zeros((HIDDEN,), jnp.float32),
            "wk": nrm((HIDDEN, HIDDEN)), "bk": jnp.zeros((HIDDEN,), jnp.float32),
            "wv": nrm((HIDDEN, HIDDEN)), "bv": jnp.zeros((HIDDEN,), jnp.float32),
            "wo": nrm((HIDDEN, HIDDEN)), "bo": jnp.zeros((HIDDEN,), jnp.float32),
            "ln1_g": jnp.ones((HIDDEN,), jnp.float32),
            "ln1_b": jnp.zeros((HIDDEN,), jnp.float32),
            "w1": nrm((HIDDEN, INTERMEDIATE)),
            "b1": jnp.zeros((INTERMEDIATE,), jnp.float32),
            "w2": nrm((INTERMEDIATE, HIDDEN)),
            "b2": jnp.zeros((HIDDEN,), jnp.float32),
            "ln2_g": jnp.ones((HIDDEN,), jnp.float32),
            "ln2_b": jnp.zeros((HIDDEN,), jnp.float32),
        })
    return params


# ----------------------------- forward pass -----------------------------
def bert_intent_slot_forward(params, input_ids, seq_lengths=None):
    """Mirrors Bert_Intent_Slot.forward: returns (slots (B,out_slot,S-1), intent (B,out_int))."""
    del seq_lengths  # unused by the PyTorch forward as well
    B, S = input_ids.shape
    bf16 = jnp.bfloat16
    scale = 1.0 / (HEAD_DIM ** 0.5)

    # attention_mask = (input != 0).float(); precompute BERT-style additive mask,
    # fully broadcast to (B*nH, S, S) so the kernel does a single add.
    attention_mask = (input_ids != 0).astype(jnp.float32)                 # (B, S)
    mask_add = (1.0 - attention_mask) * (-10000.0)                        # (B, S)
    mask_add = jnp.broadcast_to(mask_add[:, None, None, :],
                                (B, N_HEADS, S, S)).reshape(B * N_HEADS, S, S)

    # --- BERT embeddings (gather in glue; LayerNorm inside the fused kernel) ---
    pos_ids = jnp.arange(S)
    emb = (jnp.take(params["word_emb"], input_ids, axis=0)
           + params["pos_emb"][pos_ids][None, :, :]
           + params["type_emb"][0][None, None, :]).reshape(B * S, HIDDEN)

    # --- pack per-layer weights: stacked arrays, fused QKV (Q pre-scaled), bf16 ---
    lyrs = params["layers"]
    wqkv = jnp.stack([jnp.concatenate([l["wq"] * scale, l["wk"], l["wv"]], axis=1)
                      for l in lyrs]).astype(bf16)                         # (L, H, 3H)
    bqkv = jnp.stack([jnp.concatenate([l["bq"] * scale, l["bk"], l["bv"]])[None, :]
                      for l in lyrs])                                      # (L, 1, 3H)
    wo = jnp.stack([l["wo"] for l in lyrs]).astype(bf16)
    bo = jnp.stack([l["bo"][None, :] for l in lyrs])
    ln1_g = jnp.stack([l["ln1_g"][None, :] for l in lyrs])
    ln1_b = jnp.stack([l["ln1_b"][None, :] for l in lyrs])
    w1 = jnp.stack([l["w1"] for l in lyrs]).astype(bf16)
    b1 = jnp.stack([l["b1"][None, :] for l in lyrs])
    w2 = jnp.stack([l["w2"] for l in lyrs]).astype(bf16)
    b2 = jnp.stack([l["b2"][None, :] for l in lyrs])
    ln2_g = jnp.stack([l["ln2_g"][None, :] for l in lyrs])
    ln2_b = jnp.stack([l["ln2_b"][None, :] for l in lyrs])

    # --- fused, 128-lane-padded slot+intent head weights ---
    w_head = jnp.zeros((HIDDEN, HEAD_PAD), jnp.float32)
    w_head = w_head.at[:, :OUT_SLOT].set(params["w_slot"])
    w_head = w_head.at[:, OUT_SLOT:OUT_SLOT + OUT_INT].set(params["w_int"])
    w_head = w_head.astype(bf16)
    b_head = jnp.zeros((1, HEAD_PAD), jnp.float32)
    b_head = b_head.at[0, :OUT_SLOT].set(params["b_slot"])
    b_head = b_head.at[0, OUT_SLOT:OUT_SLOT + OUT_INT].set(params["b_int"])

    emb_g = params["emb_ln_g"][None, :]
    emb_b = params["emb_ln_b"][None, :]

    inputs = (emb, mask_add, emb_g, emb_b,
              wqkv, bqkv, wo, bo,
              ln1_g, ln1_b, w1, b1, w2, b2, ln2_g, ln2_b,
              w_head, b_head)

    kernel = functools.partial(_fused_bert_kernel, batch=B, seq=S)
    head_out = pl.pallas_call(
        kernel,
        out_shape=jax.ShapeDtypeStruct((B * S, HEAD_PAD), jnp.float32),
        grid=(1,),
        in_specs=[_full_spec(a) for a in inputs],
        out_specs=pl.BlockSpec((B * S, HEAD_PAD), lambda i: (0, 0)),
        compiler_params=pltpu.CompilerParams(
            dimension_semantics=("arbitrary",)),
    )(*inputs)

    head_out = head_out.reshape(B, S, HEAD_PAD)
    # slots = self.slot_out(output[:, 1:, :]) ; permute(0, 2, 1)
    slots = head_out[:, 1:, :OUT_SLOT].transpose(0, 2, 1)        # (B, out_slot, S-1)
    # intent = self.intent_out(output[:, 0, :])
    intent = head_out[:, 0, OUT_SLOT:OUT_SLOT + OUT_INT]         # (B, out_int)
    return slots, intent


# --------------------------------- main ---------------------------------
if __name__ == "__main__":
    B, S = 2, 8
    key = jax.random.PRNGKey(0)
    k_par, k_ids = jax.random.split(key)

    params = init_params(k_par)

    input_ids = jax.random.randint(k_ids, (B, S), 1, VOCAB, dtype=jnp.int32)
    # introduce padding (token id 0) so the attention mask is exercised
    input_ids = input_ids.at[0, 6:].set(0)
    input_ids = input_ids.at[1, 7:].set(0)
    seq_lengths = jnp.array([6, 7], dtype=jnp.int32)

    fwd = jax.jit(bert_intent_slot_forward)
    slots, intent = fwd(params, input_ids, seq_lengths)
    jax.block_until_ready((slots, intent))

    assert slots.shape == (B, OUT_SLOT, S - 1)
    assert intent.shape == (B, OUT_INT)
    assert jnp.all(jnp.isfinite(slots)) and jnp.all(jnp.isfinite(intent))
    print("KERNEL_OK")
</pallas_src>

<mosaic_0001>
module attributes {stable_mosaic.version = 11 : i64} {
  func.func @_fused_bert_kernel(%arg0: i32, %arg1: memref<16x64xf32, #tpu.memory_space<vmem>>, %arg2: memref<8x8x8xf32, #tpu.memory_space<vmem>>, %arg3: memref<1x64xf32, #tpu.memory_space<vmem>>, %arg4: memref<1x64xf32, #tpu.memory_space<vmem>>, %arg5: memref<2x64x192xbf16, #tpu.memory_space<vmem>>, %arg6: memref<2x1x192xf32, #tpu.memory_space<vmem>>, %arg7: memref<2x64x64xbf16, #tpu.memory_space<vmem>>, %arg8: memref<2x1x64xf32, #tpu.memory_space<vmem>>, %arg9: memref<2x1x64xf32, #tpu.memory_space<vmem>>, %arg10: memref<2x1x64xf32, #tpu.memory_space<vmem>>, %arg11: memref<2x64x128xbf16, #tpu.memory_space<vmem>>, %arg12: memref<2x1x128xf32, #tpu.memory_space<vmem>>, %arg13: memref<2x128x64xbf16, #tpu.memory_space<vmem>>, %arg14: memref<2x1x64xf32, #tpu.memory_space<vmem>>, %arg15: memref<2x1x64xf32, #tpu.memory_space<vmem>>, %arg16: memref<2x1x64xf32, #tpu.memory_space<vmem>>, %arg17: memref<64x128xbf16, #tpu.memory_space<vmem>>, %arg18: memref<1x128xf32, #tpu.memory_space<vmem>>, %arg19: memref<16x128xf32, #tpu.memory_space<vmem>>) attributes {dimension_semantics = [#tpu.dimension_semantics<arbitrary>], iteration_bounds = array<i64: 1>, scalar_prefetch = 0 : i64, scratch_operands = 0 : i64, tpu.core_type = #tpu.core_type<tc>, window_params = [{pipeline_mode = #tpu.pipeline_mode<synchronous>, transform_indices = @transform_0, window_bounds = array<i64: 16, 64>}, {pipeline_mode = #tpu.pipeline_mode<synchronous>, transform_indices = @transform_1, window_bounds = array<i64: 8, 8, 8>}, {pipeline_mode = #tpu.pipeline_mode<synchronous>, transform_indices = @transform_2, window_bounds = array<i64: 1, 64>}, {pipeline_mode = #tpu.pipeline_mode<synchronous>, transform_indices = @transform_3, window_bounds = array<i64: 1, 64>}, {pipeline_mode = #tpu.pipeline_mode<synchronous>, transform_indices = @transform_4, window_bounds = array<i64: 2, 64, 192>}, {pipeline_mode = #tpu.pipeline_mode<synchronous>, transform_indices = @transform_5, window_bounds = array<i64: 2, 1, 192>}, {pipeline_mode = #tpu.pipeline_mode<synchronous>, transform_indices = @transform_6, window_bounds = array<i64: 2, 64, 64>}, {pipeline_mode = #tpu.pipeline_mode<synchronous>, transform_indices = @transform_7, window_bounds = array<i64: 2, 1, 64>}, {pipeline_mode = #tpu.pipeline_mode<synchronous>, transform_indices = @transform_8, window_bounds = array<i64: 2, 1, 64>}, {pipeline_mode = #tpu.pipeline_mode<synchronous>, transform_indices = @transform_9, window_bounds = array<i64: 2, 1, 64>}, {pipeline_mode = #tpu.pipeline_mode<synchronous>, transform_indices = @transform_10, window_bounds = array<i64: 2, 64, 128>}, {pipeline_mode = #tpu.pipeline_mode<synchronous>, transform_indices = @transform_11, window_bounds = array<i64: 2, 1, 128>}, {pipeline_mode = #tpu.pipeline_mode<synchronous>, transform_indices = @transform_12, window_bounds = array<i64: 2, 128, 64>}, {pipeline_mode = #tpu.pipeline_mode<synchronous>, transform_indices = @transform_13, window_bounds = array<i64: 2, 1, 64>}, {pipeline_mode = #tpu.pipeline_mode<synchronous>, transform_indices = @transform_14, window_bounds = array<i64: 2, 1, 64>}, {pipeline_mode = #tpu.pipeline_mode<synchronous>, transform_indices = @transform_15, window_bounds = array<i64: 2, 1, 64>}, {pipeline_mode = #tpu.pipeline_mode<synchronous>, transform_indices = @transform_16, window_bounds = array<i64: 64, 128>}, {pipeline_mode = #tpu.pipeline_mode<synchronous>, transform_indices = @transform_17, window_bounds = array<i64: 1, 128>}, {pipeline_mode = #tpu.pipeline_mode<synchronous>, transform_indices = @transform_18, window_bounds = array<i64: 16, 128>}]} {
    %c0 = arith.constant 0 : index
    %c0_0 = arith.constant 0 : index
    %c0_1 = arith.constant 0 : index
    %0 = vector.load %arg2[%c0, %c0_0, %c0_1] : memref<8x8x8xf32, #tpu.memory_space<vmem>>, vector<8x8x8xf32>
    %c0_2 = arith.constant 0 : index
    %c0_3 = arith.constant 0 : index
    %1 = vector.load %arg1[%c0_2, %c0_3] : memref<16x64xf32, #tpu.memory_space<vmem>>, vector<16x64xf32>
    %c0_4 = arith.constant 0 : index
    %c0_5 = arith.constant 0 : index
    %2 = vector.load %arg3[%c0_4, %c0_5] : memref<1x64xf32, #tpu.memory_space<vmem>>, vector<1x64xf32>
    %c0_6 = arith.constant 0 : index
    %c0_7 = arith.constant 0 : index
    %3 = vector.load %arg4[%c0_6, %c0_7] : memref<1x64xf32, #tpu.memory_space<vmem>>, vector<1x64xf32>
    %cst = arith.constant dense<0.000000e+00> : vector<16xf32>
    %4 = vector.multi_reduction <add>, %1, %cst [1] : vector<16x64xf32> to vector<16xf32>
    %5 = vector.shape_cast %4 : vector<16xf32> to vector<16x1xf32>
    %cst_8 = arith.constant 6.400000e+01 : f32
    %6 = vector.broadcast %cst_8 : f32 to vector<16x1xf32>
    %7 = arith.divf %5, %6 : vector<16x1xf32>
    %8 = vector.broadcast %7 : vector<16x1xf32> to vector<16x64xf32>
    %9 = arith.subf %1, %8 : vector<16x64xf32>
    %10 = vector.broadcast %7 : vector<16x1xf32> to vector<16x64xf32>
    %11 = arith.subf %1, %10 : vector<16x64xf32>
    %12 = arith.mulf %9, %11 : vector<16x64xf32>
    %cst_9 = arith.constant dense<0.000000e+00> : vector<16xf32>
    %13 = vector.multi_reduction <add>, %12, %cst_9 [1] : vector<16x64xf32> to vector<16xf32>
    %14 = vector.shape_cast %13 : vector<16xf32> to vector<16x1xf32>
    %cst_10 = arith.constant 6.400000e+01 : f32
    %15 = vector.broadcast %cst_10 : f32 to vector<16x1xf32>
    %16 = arith.divf %14, %15 : vector<16x1xf32>
    %17 = vector.broadcast %7 : vector<16x1xf32> to vector<16x64xf32>
    %18 = arith.subf %1, %17 : vector<16x64xf32>
    %cst_11 = arith.constant 9.99999996E-13 : f32
    %19 = vector.broadcast %cst_11 : f32 to vector<16x1xf32>
    %20 = arith.addf %16, %19 : vector<16x1xf32>
    %21 = math.rsqrt %20 : vector<16x1xf32>
    %22 = vector.broadcast %21 : vector<16x1xf32> to vector<16x64xf32>
    %23 = arith.mulf %18, %22 : vector<16x64xf32>
    %24 = vector.broadcast %2 : vector<1x64xf32> to vector<16x64xf32>
    %25 = arith.mulf %23, %24 : vector<16x64xf32>
    %26 = vector.broadcast %3 : vector<1x64xf32> to vector<16x64xf32>
    %27 = arith.addf %25, %26 : vector<16x64xf32>
    %c0_12 = arith.constant 0 : index
    %c0_13 = arith.constant 0 : index
    %c0_14 = arith.constant 0 : index
    %28 = vector.load %arg5[%c0_12, %c0_13, %c0_14] : memref<2x64x192xbf16, #tpu.memory_space<vmem>>, vector<1x64x192xbf16>
    %29 = vector.shape_cast %28 : vector<1x64x192xbf16> to vector<64x192xbf16>
    %30 = arith.truncf %27 : vector<16x64xf32> to vector<16x64xbf16>
    %cst_15 = arith.constant dense<0.000000e+00> : vector<16x192xf32>
    %31 = tpu.matmul %30, %29, %cst_15 {dimension_numbers = #tpu.dot_dimension_numbers<[1], [0], [0], [1], [0, 0, 1, 1], [], []>} : vector<16x64xbf16>, vector<64x192xbf16>, vector<16x192xf32> -> vector<16x192xf32>
    %c0_16 = arith.constant 0 : index
    %c0_17 = arith.constant 0 : index
    %c0_18 = arith.constant 0 : index
    %32 = vector.load %arg6[%c0_16, %c0_17, %c0_18] : memref<2x1x192xf32, #tpu.memory_space<vmem>>, vector<1x1x192xf32>
    %33 = vector.shape_cast %32 : vector<1x1x192xf32> to vector<1x192xf32>
    %34 = vector.broadcast %33 : vector<1x192xf32> to vector<16x192xf32>
    %35 = arith.addf %31, %34 : vector<16x192xf32>
    %36 = vector.extract_strided_slice %35 {offsets = [0, 0], sizes = [8, 192], strides = [1, 1]} : vector<16x192xf32> to vector<8x192xf32>
    %37 = vector.extract_strided_slice %36 {offsets = [0, 0], sizes = [8, 16], strides = [1, 1]} : vector<8x192xf32> to vector<8x16xf32>
    %38 = vector.extract_strided_slice %36 {offsets = [0, 64], sizes = [8, 16], strides = [1, 1]} : vector<8x192xf32> to vector<8x16xf32>
    %39 = vector.extract_strided_slice %36 {offsets = [0, 128], sizes = [8, 16], strides = [1, 1]} : vector<8x192xf32> to vector<8x16xf32>
    %40 = vector.extract_strided_slice %36 {offsets = [0, 16], sizes = [8, 16], strides = [1, 1]} : vector<8x192xf32> to vector<8x16xf32>
    %41 = vector.extract_strided_slice %36 {offsets = [0, 80], sizes = [8, 16], strides = [1, 1]} : vector<8x192xf32> to vector<8x16xf32>
    %42 = vector.extract_strided_slice %36 {offsets = [0, 144], sizes = [8, 16], strides = [1, 1]} : vector<8x192xf32> to vector<8x16xf32>
    %43 = vector.extract_strided_slice %36 {offsets = [0, 32], sizes = [8, 16], strides = [1, 1]} : vector<8x192xf32> to vector<8x16xf32>
    %44 = vector.extract_strided_slice %36 {offsets = [0, 96], sizes = [8, 16], strides = [1, 1]} : vector<8x192xf32> to vector<8x16xf32>
    %45 = vector.extract_strided_slice %36 {offsets = [0, 160], sizes = [8, 16], strides = [1, 1]} : vector<8x192xf32> to vector<8x16xf32>
    %46 = vector.extract_strided_slice %36 {offsets = [0, 48], sizes = [8, 16], strides = [1, 1]} : vector<8x192xf32> to vector<8x16xf32>
    %47 = vector.extract_strided_slice %36 {offsets = [0, 112], sizes = [8, 16], strides = [1, 1]} : vector<8x192xf32> to vector<8x16xf32>
    %48 = vector.extract_strided_slice %36 {offsets = [0, 176], sizes = [8, 16], strides = [1, 1]} : vector<8x192xf32> to vector<8x16xf32>
    %49 = vector.extract_strided_slice %35 {offsets = [8, 0], sizes = [8, 192], strides = [1, 1]} : vector<16x192xf32> to vector<8x192xf32>
    %50 = vector.extract_strided_slice %49 {offsets = [0, 0], sizes = [8, 16], strides = [1, 1]} : vector<8x192xf32> to vector<8x16xf32>
    %51 = vector.extract_strided_slice %49 {offsets = [0, 64], sizes = [8, 16], strides = [1, 1]} : vector<8x192xf32> to vector<8x16xf32>
    %52 = vector.extract_strided_slice %49 {offsets = [0, 128], sizes = [8, 16], strides = [1, 1]} : vector<8x192xf32> to vector<8x16xf32>
    %53 = vector.extract_strided_slice %49 {offsets = [0, 16], sizes = [8, 16], strides = [1, 1]} : vector<8x192xf32> to vector<8x16xf32>
    %54 = vector.extract_strided_slice %49 {offsets = [0, 80], sizes = [8, 16], strides = [1, 1]} : vector<8x192xf32> to vector<8x16xf32>
    %55 = vector.extract_strided_slice %49 {offsets = [0, 144], sizes = [8, 16], strides = [1, 1]} : vector<8x192xf32> to vector<8x16xf32>
    %56 = vector.extract_strided_slice %49 {offsets = [0, 32], sizes = [8, 16], strides = [1, 1]} : vector<8x192xf32> to vector<8x16xf32>
    %57 = vector.extract_strided_slice %49 {offsets = [0, 96], sizes = [8, 16], strides = [1, 1]} : vector<8x192xf32> to vector<8x16xf32>
    %58 = vector.extract_strided_slice %49 {offsets = [0, 160], sizes = [8, 16], strides = [1, 1]} : vector<8x192xf32> to vector<8x16xf32>
    %59 = vector.extract_strided_slice %49 {offsets = [0, 48], sizes = [8, 16], strides = [1, 1]} : vector<8x192xf32> to vector<8x16xf32>
    %60 = vector.extract_strided_slice %49 {offsets = [0, 112], sizes = [8, 16], strides = [1, 1]} : vector<8x192xf32> to vector<8x16xf32>
    %61 = vector.extract_strided_slice %49 {offsets = [0, 176], sizes = [8, 16], strides = [1, 1]} : vector<8x192xf32> to vector<8x16xf32>
    %62 = vector.shape_cast %37 : vector<8x16xf32> to vector<1x8x16xf32>
    %63 = vector.shape_cast %40 : vector<8x16xf32> to vector<1x8x16xf32>
    %64 = vector.shape_cast %43 : vector<8x16xf32> to vector<1x8x16xf32>
    %65 = vector.shape_cast %46 : vector<8x16xf32> to vector<1x8x16xf32>
    %66 = vector.shape_cast %50 : vector<8x16xf32> to vector<1x8x16xf32>
    %67 = vector.shape_cast %53 : vector<8x16xf32> to vector<1x8x16xf32>
    %68 = vector.shape_cast %56 : vector<8x16xf32> to vector<1x8x16xf32>
    %69 = vector.shape_cast %59 : vector<8x16xf32> to vector<1x8x16xf32>
    %70 = tpu.concatenate %62, %63, %64, %65, %66, %67, %68, %69 in 0 : vector<1x8x16xf32>, vector<1x8x16xf32>, vector<1x8x16xf32>, vector<1x8x16xf32>, vector<1x8x16xf32>, vector<1x8x16xf32>, vector<1x8x16xf32>, vector<1x8x16xf32> -> vector<8x8x16xf32>
    %71 = arith.truncf %70 : vector<8x8x16xf32> to vector<8x8x16xbf16>
    %72 = vector.shape_cast %38 : vector<8x16xf32> to vector<1x8x16xf32>
    %73 = vector.shape_cast %41 : vector<8x16xf32> to vector<1x8x16xf32>
    %74 = vector.shape_cast %44 : vector<8x16xf32> to vector<1x8x16xf32>
    %75 = vector.shape_cast %47 : vector<8x16xf32> to vector<1x8x16xf32>
    %76 = vector.shape_cast %51 : vector<8x16xf32> to vector<1x8x16xf32>
    %77 = vector.shape_cast %54 : vector<8x16xf32> to vector<1x8x16xf32>
    %78 = vector.shape_cast %57 : vector<8x16xf32> to vector<1x8x16xf32>
    %79 = vector.shape_cast %60 : vector<8x16xf32> to vector<1x8x16xf32>
    %80 = tpu.concatenate %72, %73, %74, %75, %76, %77, %78, %79 in 0 : vector<1x8x16xf32>, vector<1x8x16xf32>, vector<1x8x16xf32>, vector<1x8x16xf32>, vector<1x8x16xf32>, vector<1x8x16xf32>, vector<1x8x16xf32>, vector<1x8x16xf32> -> vector<8x8x16xf32>
    %81 = arith.truncf %80 : vector<8x8x16xf32> to vector<8x8x16xbf16>
    %82 = vector.shape_cast %39 : vector<8x16xf32> to vector<1x8x16xf32>
    %83 = vector.shape_cast %42 : vector<8x16xf32> to vector<1x8x16xf32>
    %84 = vector.shape_cast %45 : vector<8x16xf32> to vector<1x8x16xf32>
    %85 = vector.shape_cast %48 : vector<8x16xf32> to vector<1x8x16xf32>
    %86 = vector.shape_cast %52 : vector<8x16xf32> to vector<1x8x16xf32>
    %87 = vector.shape_cast %55 : vector<8x16xf32> to vector<1x8x16xf32>
    %88 = vector.shape_cast %58 : vector<8x16xf32> to vector<1x8x16xf32>
    %89 = vector.shape_cast %61 : vector<8x16xf32> to vector<1x8x16xf32>
    %90 = tpu.concatenate %82, %83, %84, %85, %86, %87, %88, %89 in 0 : vector<1x8x16xf32>, vector<1x8x16xf32>, vector<1x8x16xf32>, vector<1x8x16xf32>, vector<1x8x16xf32>, vector<1x8x16xf32>, vector<1x8x16xf32>, vector<1x8x16xf32> -> vector<8x8x16xf32>
    %91 = arith.truncf %90 : vector<8x8x16xf32> to vector<8x8x16xbf16>
    "tpu.trace_start"() <{level = 10 : i32, message = "nqd,nkd->nqk"}> : () -> ()
    %cst_19 = arith.constant dense<0.000000e+00> : vector<8x8x8xf32>
    %92 = tpu.matmul %71, %81, %cst_19 {dimension_numbers = #tpu.dot_dimension_numbers<[2], [2], [1], [1], [0, 0, 0, 1, 1, 1], [0], [0]>} : vector<8x8x16xbf16>, vector<8x8x16xbf16>, vector<8x8x8xf32> -> vector<8x8x8xf32>
    "tpu.trace_stop"() : () -> ()
    %93 = arith.addf %92, %0 : vector<8x8x8xf32>
    %cst_20 = arith.constant dense<0xFF800000> : vector<8x8xf32>
    %94 = vector.multi_reduction <maximumf>, %93, %cst_20 [2] : vector<8x8x8xf32> to vector<8x8xf32>
    %95 = vector.shape_cast %94 : vector<8x8xf32> to vector<8x8x1xf32>
    %96 = vector.broadcast %95 : vector<8x8x1xf32> to vector<8x8x8xf32>
    %97 = arith.subf %93, %96 : vector<8x8x8xf32>
    %98 = math.exp %97 : vector<8x8x8xf32>
    %cst_21 = arith.constant dense<0.000000e+00> : vector<8x8xf32>
    %99 = vector.multi_reduction <add>, %98, %cst_21 [2] : vector<8x8x8xf32> to vector<8x8xf32>
    %100 = vector.shape_cast %99 : vector<8x8xf32> to vector<8x8x1xf32>
    %101 = tpu.reciprocal %100 {approx = true} : vector<8x8x1xf32> -> vector<8x8x1xf32>
    %102 = vector.broadcast %101 : vector<8x8x1xf32> to vector<8x8x8xf32>
    %103 = arith.mulf %98, %102 : vector<8x8x8xf32>
    %104 = arith.truncf %103 : vector<8x8x8xf32> to vector<8x8x8xbf16>
    "tpu.trace_start"() <{level = 10 : i32, message = "nqk,nkd->nqd"}> : () -> ()
    %cst_22 = arith.constant dense<0.000000e+00> : vector<8x8x16xf32>
    %105 = tpu.matmul %104, %91, %cst_22 {dimension_numbers = #tpu.dot_dimension_numbers<[2], [1], [1], [2], [0, 0, 0, 1, 1, 2], [0], [0]>} : vector<8x8x8xbf16>, vector<8x8x16xbf16>, vector<8x8x16xf32> -> vector<8x8x16xf32>
    "tpu.trace_stop"() : () -> ()
    %106 = vector.extract_strided_slice %105 {offsets = [0, 0, 0], sizes = [1, 8, 16], strides = [1, 1, 1]} : vector<8x8x16xf32> to vector<1x8x16xf32>
    %107 = vector.shape_cast %106 : vector<1x8x16xf32> to vector<8x16xf32>
    %108 = vector.extract_strided_slice %105 {offsets = [1, 0, 0], sizes = [1, 8, 16], strides = [1, 1, 1]} : vector<8x8x16xf32> to vector<1x8x16xf32>
    %109 = vector.shape_cast %108 : vector<1x8x16xf32> to vector<8x16xf32>
    %110 = vector.extract_strided_slice %105 {offsets = [2, 0, 0], sizes = [1, 8, 16], strides = [1, 1, 1]} : vector<8x8x16xf32> to vector<1x8x16xf32>
    %111 = vector.shape_cast %110 : vector<1x8x16xf32> to vector<8x16xf32>
    %112 = vector.extract_strided_slice %105 {offsets = [3, 0, 0], sizes = [1, 8, 16], strides = [1, 1, 1]} : vector<8x8x16xf32> to vector<1x8x16xf32>
    %113 = vector.shape_cast %112 : vector<1x8x16xf32> to vector<8x16xf32>
    %114 = tpu.concatenate %107, %109, %111, %113 in 1 : vector<8x16xf32>, vector<8x16xf32>, vector<8x16xf32>, vector<8x16xf32> -> vector<8x64xf32>
    %115 = vector.extract_strided_slice %105 {offsets = [4, 0, 0], sizes = [1, 8, 16], strides = [1, 1, 1]} : vector<8x8x16xf32> to vector<1x8x16xf32>
    %116 = vector.shape_cast %115 : vector<1x8x16xf32> to vector<8x16xf32>
    %117 = vector.extract_strided_slice %105 {offsets = [5, 0, 0], sizes = [1, 8, 16], strides = [1, 1, 1]} : vector<8x8x16xf32> to vector<1x8x16xf32>
    %118 = vector.shape_cast %117 : vector<1x8x16xf32> to vector<8x16xf32>
    %119 = vector.extract_strided_slice %105 {offsets = [6, 0, 0], sizes = [1, 8, 16], strides = [1, 1, 1]} : vector<8x8x16xf32> to vector<1x8x16xf32>
    %120 = vector.shape_cast %119 : vector<1x8x16xf32> to vector<8x16xf32>
    %121 = vector.extract_strided_slice %105 {offsets = [7, 0, 0], sizes = [1, 8, 16], strides = [1, 1, 1]} : vector<8x8x16xf32> to vector<1x8x16xf32>
    %122 = vector.shape_cast %121 : vector<1x8x16xf32> to vector<8x16xf32>
    %123 = tpu.concatenate %116, %118, %120, %122 in 1 : vector<8x16xf32>, vector<8x16xf32>, vector<8x16xf32>, vector<8x16xf32> -> vector<8x64xf32>
    %124 = tpu.concatenate %114, %123 in 0 : vector<8x64xf32>, vector<8x64xf32> -> vector<16x64xf32>
    %c0_23 = arith.constant 0 : index
    %c0_24 = arith.constant 0 : index
    %c0_25 = arith.constant 0 : index
    %125 = vector.load %arg7[%c0_23, %c0_24, %c0_25] : memref<2x64x64xbf16, #tpu.memory_space<vmem>>, vector<1x64x64xbf16>
    %126 = vector.shape_cast %125 : vector<1x64x64xbf16> to vector<64x64xbf16>
    %127 = arith.truncf %124 : vector<16x64xf32> to vector<16x64xbf16>
    %cst_26 = arith.constant dense<0.000000e+00> : vector<16x64xf32>
    %128 = tpu.matmul %127, %126, %cst_26 {dimension_numbers = #tpu.dot_dimension_numbers<[1], [0], [0], [1], [0, 0, 1, 1], [], []>} : vector<16x64xbf16>, vector<64x64xbf16>, vector<16x64xf32> -> vector<16x64xf32>
    %c0_27 = arith.constant 0 : index
    %c0_28 = arith.constant 0 : index
    %c0_29 = arith.constant 0 : index
    %129 = vector.load %arg8[%c0_27, %c0_28, %c0_29] : memref<2x1x64xf32, #tpu.memory_space<vmem>>, vector<1x1x64xf32>
    %130 = vector.shape_cast %129 : vector<1x1x64xf32> to vector<1x64xf32>
    %131 = vector.broadcast %130 : vector<1x64xf32> to vector<16x64xf32>
    %132 = arith.addf %128, %131 : vector<16x64xf32>
    %133 = arith.addf %132, %27 : vector<16x64xf32>
    %c0_30 = arith.constant 0 : index
    %c0_31 = arith.constant 0 : index
    %c0_32 = arith.constant 0 : index
    %134 = vector.load %arg9[%c0_30, %c0_31, %c0_32] : memref<2x1x64xf32, #tpu.memory_space<vmem>>, vector<1x1x64xf32>
    %135 = vector.shape_cast %134 : vector<1x1x64xf32> to vector<1x64xf32>
    %c0_33 = arith.constant 0 : index
    %c0_34 = arith.constant 0 : index
    %c0_35 = arith.constant 0 : index
    %136 = vector.load %arg10[%c0_33, %c0_34, %c0_35] : memref<2x1x64xf32, #tpu.memory_space<vmem>>, vector<1x1x64xf32>
    %137 = vector.shape_cast %136 : vector<1x1x64xf32> to vector<1x64xf32>
    %cst_36 = arith.constant dense<0.000000e+00> : vector<16xf32>
    %138 = vector.multi_reduction <add>, %133, %cst_36 [1] : vector<16x64xf32> to vector<16xf32>
    %139 = vector.shape_cast %138 : vector<16xf32> to vector<16x1xf32>
    %cst_37 = arith.constant 6.400000e+01 : f32
    %140 = vector.broadcast %cst_37 : f32 to vector<16x1xf32>
    %141 = arith.divf %139, %140 : vector<16x1xf32>
    %142 = vector.broadcast %141 : vector<16x1xf32> to vector<16x64xf32>
    %143 = arith.subf %133, %142 : vector<16x64xf32>
    %144 = vector.broadcast %141 : vector<16x1xf32> to vector<16x64xf32>
    %145 = arith.subf %133, %144 : vector<16x64xf32>
    %146 = arith.mulf %143, %145 : vector<16x64xf32>
    %cst_38 = arith.constant dense<0.000000e+00> : vector<16xf32>
    %147 = vector.multi_reduction <add>, %146, %cst_38 [1] : vector<16x64xf32> to vector<16xf32>
    %148 = vector.shape_cast %147 : vector<16xf32> to vector<16x1xf32>
    %cst_39 = arith.constant 6.400000e+01 : f32
    %149 = vector.broadcast %cst_39 : f32 to vector<16x1xf32>
    %150 = arith.divf %148, %149 : vector<16x1xf32>
    %151 = vector.broadcast %141 : vector<16x1xf32> to vector<16x64xf32>
    %152 = arith.subf %133, %151 : vector<16x64xf32>
    %cst_40 = arith.constant 9.99999996E-13 : f32
    %153 = vector.broadcast %cst_40 : f32 to vector<16x1xf32>
    %154 = arith.addf %150, %153 : vector<16x1xf32>
    %155 = math.rsqrt %154 : vector<16x1xf32>
    %156 = vector.broadcast %155 : vector<16x1xf32> to vector<16x64xf32>
    %157 = arith.mulf %152, %156 : vector<16x64xf32>
    %158 = vector.broadcast %135 : vector<1x64xf32> to vector<16x64xf32>
    %159 = arith.mulf %157, %158 : vector<16x64xf32>
    %160 = vector.broadcast %137 : vector<1x64xf32> to vector<16x64xf32>
    %161 = arith.addf %159, %160 : vector<16x64xf32>
    %c0_41 = arith.constant 0 : index
    %c0_42 = arith.constant 0 : index
    %c0_43 = arith.constant 0 : index
    %162 = vector.load %arg11[%c0_41, %c0_42, %c0_43] : memref<2x64x128xbf16, #tpu.memory_space<vmem>>, vector<1x64x128xbf16>
    %163 = vector.shape_cast %162 : vector<1x64x128xbf16> to vector<64x128xbf16>
    %164 = arith.truncf %161 : vector<16x64xf32> to vector<16x64xbf16>
    %cst_44 = arith.constant dense<0.000000e+00> : vector<16x128xf32>
    %165 = tpu.matmul %164, %163, %cst_44 {dimension_numbers = #tpu.dot_dimension_numbers<[1], [0], [0], [1], [0, 0, 1, 1], [], []>} : vector<16x64xbf16>, vector<64x128xbf16>, vector<16x128xf32> -> vector<16x128xf32>
    %c0_45 = arith.constant 0 : index
    %c0_46 = arith.constant 0 : index
    %c0_47 = arith.constant 0 : index
    %166 = vector.load %arg12[%c0_45, %c0_46, %c0_47] : memref<2x1x128xf32, #tpu.memory_space<vmem>>, vector<1x1x128xf32>
    %167 = vector.shape_cast %166 : vector<1x1x128xf32> to vector<1x128xf32>
    %168 = vector.broadcast %167 : vector<1x128xf32> to vector<16x128xf32>
    %169 = arith.addf %165, %168 : vector<16x128xf32>
    %cst_48 = arith.constant 5.000000e-01 : f32
    %170 = vector.broadcast %cst_48 : f32 to vector<16x128xf32>
    %171 = arith.mulf %170, %169 : vector<16x128xf32>
    %cst_49 = arith.constant 4.471500e-02 : f32
    %172 = vector.broadcast %cst_49 : f32 to vector<16x128xf32>
    %173 = arith.mulf %172, %169 : vector<16x128xf32>
    %174 = arith.mulf %173, %169 : vector<16x128xf32>
    %175 = arith.mulf %174, %169 : vector<16x128xf32>
    %176 = arith.addf %169, %175 : vector<16x128xf32>
    %cst_50 = arith.constant 0.797884583 : f32
    %177 = vector.broadcast %cst_50 : f32 to vector<16x128xf32>
    %178 = arith.mulf %177, %176 : vector<16x128xf32>
    %179 = math.tanh %178 : vector<16x128xf32>
    %cst_51 = arith.constant 1.000000e+00 : f32
    %180 = vector.broadcast %cst_51 : f32 to vector<16x128xf32>
    %181 = arith.addf %180, %179 : vector<16x128xf32>
    %182 = arith.mulf %171, %181 : vector<16x128xf32>
    %c0_52 = arith.constant 0 : index
    %c0_53 = arith.constant 0 : index
    %c0_54 = arith.constant 0 : index
    %183 = vector.load %arg13[%c0_52, %c0_53, %c0_54] : memref<2x128x64xbf16, #tpu.memory_space<vmem>>, vector<1x128x64xbf16>
    %184 = vector.shape_cast %183 : vector<1x128x64xbf16> to vector<128x64xbf16>
    %185 = arith.truncf %182 : vector<16x128xf32> to vector<16x128xbf16>
    %cst_55 = arith.constant dense<0.000000e+00> : vector<16x64xf32>
    %186 = tpu.matmul %185, %184, %cst_55 {dimension_numbers = #tpu.dot_dimension_numbers<[1], [0], [0], [1], [0, 0, 1, 1], [], []>} : vector<16x128xbf16>, vector<128x64xbf16>, vector<16x64xf32> -> vector<16x64xf32>
    %c0_56 = arith.constant 0 : index
    %c0_57 = arith.constant 0 : index
    %c0_58 = arith.constant 0 : index
    %187 = vector.load %arg14[%c0_56, %c0_57, %c0_58] : memref<2x1x64xf32, #tpu.memory_space<vmem>>, vector<1x1x64xf32>
    %188 = vector.shape_cast %187 : vector<1x1x64xf32> to vector<1x64xf32>
    %189 = vector.broadcast %188 : vector<1x64xf32> to vector<16x64xf32>
    %190 = arith.addf %186, %189 : vector<16x64xf32>
    %191 = arith.addf %190, %161 : vector<16x64xf32>
    %c0_59 = arith.constant 0 : index
    %c0_60 = arith.constant 0 : index
    %c0_61 = arith.constant 0 : index
    %192 = vector.load %arg15[%c0_59, %c0_60, %c0_61] : memref<2x1x64xf32, #tpu.memory_space<vmem>>, vector<1x1x64xf32>
    %193 = vector.shape_cast %192 : vector<1x1x64xf32> to vector<1x64xf32>
    %c0_62 = arith.constant 0 : index
    %c0_63 = arith.constant 0 : index
    %c0_64 = arith.constant 0 : index
    %194 = vector.load %arg16[%c0_62, %c0_63, %c0_64] : memref<2x1x64xf32, #tpu.memory_space<vmem>>, vector<1x1x64xf32>
    %195 = vector.shape_cast %194 : vector<1x1x64xf32> to vector<1x64xf32>
    %cst_65 = arith.constant dense<0.000000e+00> : vector<16xf32>
    %196 = vector.multi_reduction <add>, %191, %cst_65 [1] : vector<16x64xf32> to vector<16xf32>
    %197 = vector.shape_cast %196 : vector<16xf32> to vector<16x1xf32>
    %cst_66 = arith.constant 6.400000e+01 : f32
    %198 = vector.broadcast %cst_66 : f32 to vector<16x1xf32>
    %199 = arith.divf %197, %198 : vector<16x1xf32>
    %200 = vector.broadcast %199 : vector<16x1xf32> to vector<16x64xf32>
    %201 = arith.subf %191, %200 : vector<16x64xf32>
    %202 = vector.broadcast %199 : vector<16x1xf32> to vector<16x64xf32>
    %203 = arith.subf %191, %202 : vector<16x64xf32>
    %204 = arith.mulf %201, %203 : vector<16x64xf32>
    %cst_67 = arith.constant dense<0.000000e+00> : vector<16xf32>
    %205 = vector.multi_reduction <add>, %204, %cst_67 [1] : vector<16x64xf32> to vector<16xf32>
    %206 = vector.shape_cast %205 : vector<16xf32> to vector<16x1xf32>
    %cst_68 = arith.constant 6.400000e+01 : f32
    %207 = vector.broadcast %cst_68 : f32 to vector<16x1xf32>
    %208 = arith.divf %206, %207 : vector<16x1xf32>
    %209 = vector.broadcast %199 : vector<16x1xf32> to vector<16x64xf32>
    %210 = arith.subf %191, %209 : vector<16x64xf32>
    %cst_69 = arith.constant 9.99999996E-13 : f32
    %211 = vector.broadcast %cst_69 : f32 to vector<16x1xf32>
    %212 = arith.addf %208, %211 : vector<16x1xf32>
    %213 = math.rsqrt %212 : vector<16x1xf32>
    %214 = vector.broadcast %213 : vector<16x1xf32> to vector<16x64xf32>
    %215 = arith.mulf %210, %214 : vector<16x64xf32>
    %216 = vector.broadcast %193 : vector<1x64xf32> to vector<16x64xf32>
    %217 = arith.mulf %215, %216 : vector<16x64xf32>
    %218 = vector.broadcast %195 : vector<1x64xf32> to vector<16x64xf32>
    %219 = arith.addf %217, %218 : vector<16x64xf32>
    %c1 = arith.constant 1 : index
    %c0_70 = arith.constant 0 : index
    %c0_71 = arith.constant 0 : index
    %220 = vector.load %arg5[%c1, %c0_70, %c0_71] : memref<2x64x192xbf16, #tpu.memory_space<vmem>>, vector<1x64x192xbf16>
    %221 = vector.shape_cast %220 : vector<1x64x192xbf16> to vector<64x192xbf16>
    %222 = arith.truncf %219 : vector<16x64xf32> to vector<16x64xbf16>
    %cst_72 = arith.constant dense<0.000000e+00> : vector<16x192xf32>
    %223 = tpu.matmul %222, %221, %cst_72 {dimension_numbers = #tpu.dot_dimension_numbers<[1], [0], [0], [1], [0, 0, 1, 1], [], []>} : vector<16x64xbf16>, vector<64x192xbf16>, vector<16x192xf32> -> vector<16x192xf32>
    %c1_73 = arith.constant 1 : index
    %c0_74 = arith.constant 0 : index
    %c0_75 = arith.constant 0 : index
    %224 = vector.load %arg6[%c1_73, %c0_74, %c0_75] : memref<2x1x192xf32, #tpu.memory_space<vmem>>, vector<1x1x192xf32>
    %225 = vector.shape_cast %224 : vector<1x1x192xf32> to vector<1x192xf32>
    %226 = vector.broadcast %225 : vector<1x192xf32> to vector<16x192xf32>
    %227 = arith.addf %223, %226 : vector<16x192xf32>
    %228 = vector.extract_strided_slice %227 {offsets = [0, 0], sizes = [8, 192], strides = [1, 1]} : vector<16x192xf32> to vector<8x192xf32>
    %229 = vector.extract_strided_slice %228 {offsets = [0, 0], sizes = [8, 16], strides = [1, 1]} : vector<8x192xf32> to vector<8x16xf32>
    %230 = vector.extract_strided_slice %228 {offsets = [0, 64], sizes = [8, 16], strides = [1, 1]} : vector<8x192xf32> to vector<8x16xf32>
    %231 = vector.extract_strided_slice %228 {offsets = [0, 128], sizes = [8, 16], strides = [1, 1]} : vector<8x192xf32> to vector<8x16xf32>
    %232 = vector.extract_strided_slice %228 {offsets = [0, 16], sizes = [8, 16], strides = [1, 1]} : vector<8x192xf32> to vector<8x16xf32>
    %233 = vector.extract_strided_slice %228 {offsets = [0, 80], sizes = [8, 16], strides = [1, 1]} : vector<8x192xf32> to vector<8x16xf32>
    %234 = vector.extract_strided_slice %228 {offsets = [0, 144], sizes = [8, 16], strides = [1, 1]} : vector<8x192xf32> to vector<8x16xf32>
    %235 = vector.extract_strided_slice %228 {offsets = [0, 32], sizes = [8, 16], strides = [1, 1]} : vector<8x192xf32> to vector<8x16xf32>
    %236 = vector.extract_strided_slice %228 {offsets = [0, 96], sizes = [8, 16], strides = [1, 1]} : vector<8x192xf32> to vector<8x16xf32>
    %237 = vector.extract_strided_slice %228 {offsets = [0, 160], sizes = [8, 16], strides = [1, 1]} : vector<8x192xf32> to vector<8x16xf32>
    %238 = vector.extract_strided_slice %228 {offsets = [0, 48], sizes = [8, 16], strides = [1, 1]} : vector<8x192xf32> to vector<8x16xf32>
    %239 = vector.extract_strided_slice %228 {offsets = [0, 112], sizes = [8, 16], strides = [1, 1]} : vector<8x192xf32> to vector<8x16xf32>
    %240 = vector.extract_strided_slice %228 {offsets = [0, 176], sizes = [8, 16], strides = [1, 1]} : vector<8x192xf32> to vector<8x16xf32>
    %241 = vector.extract_strided_slice %227 {offsets = [8, 0], sizes = [8, 192], strides = [1, 1]} : vector<16x192xf32> to vector<8x192xf32>
    %242 = vector.extract_strided_slice %241 {offsets = [0, 0], sizes = [8, 16], strides = [1, 1]} : vector<8x192xf32> to vector<8x16xf32>
    %243 = vector.extract_strided_slice %241 {offsets = [0, 64], sizes = [8, 16], strides = [1, 1]} : vector<8x192xf32> to vector<8x16xf32>
    %244 = vector.extract_strided_slice %241 {offsets = [0, 128], sizes = [8, 16], strides = [1, 1]} : vector<8x192xf32> to vector<8x16xf32>
    %245 = vector.extract_strided_slice %241 {offsets = [0, 16], sizes = [8, 16], strides = [1, 1]} : vector<8x192xf32> to vector<8x16xf32>
    %246 = vector.extract_strided_slice %241 {offsets = [0, 80], sizes = [8, 16], strides = [1, 1]} : vector<8x192xf32> to vector<8x16xf32>
    %247 = vector.extract_strided_slice %241 {offsets = [0, 144], sizes = [8, 16], strides = [1, 1]} : vector<8x192xf32> to vector<8x16xf32>
    %248 = vector.extract_strided_slice %241 {offsets = [0, 32], sizes = [8, 16], strides = [1, 1]} : vector<8x192xf32> to vector<8x16xf32>
    %249 = vector.extract_strided_slice %241 {offsets = [0, 96], sizes = [8, 16], strides = [1, 1]} : vector<8x192xf32> to vector<8x16xf32>
    %250 = vector.extract_strided_slice %241 {offsets = [0, 160], sizes = [8, 16], strides = [1, 1]} : vector<8x192xf32> to vector<8x16xf32>
    %251 = vector.extract_strided_slice %241 {offsets = [0, 48], sizes = [8, 16], strides = [1, 1]} : vector<8x192xf32> to vector<8x16xf32>
    %252 = vector.extract_strided_slice %241 {offsets = [0, 112], sizes = [8, 16], strides = [1, 1]} : vector<8x192xf32> to vector<8x16xf32>
    %253 = vector.extract_strided_slice %241 {offsets = [0, 176], sizes = [8, 16], strides = [1, 1]} : vector<8x192xf32> to vector<8x16xf32>
    %254 = vector.shape_cast %229 : vector<8x16xf32> to vector<1x8x16xf32>
    %255 = vector.shape_cast %232 : vector<8x16xf32> to vector<1x8x16xf32>
    %256 = vector.shape_cast %235 : vector<8x16xf32> to vector<1x8x16xf32>
    %257 = vector.shape_cast %238 : vector<8x16xf32> to vector<1x8x16xf32>
    %258 = vector.shape_cast %242 : vector<8x16xf32> to vector<1x8x16xf32>
    %259 = vector.shape_cast %245 : vector<8x16xf32> to vector<1x8x16xf32>
    %260 = vector.shape_cast %248 : vector<8x16xf32> to vector<1x8x16xf32>
    %261 = vector.shape_cast %251 : vector<8x16xf32> to vector<1x8x16xf32>
    %262 = tpu.concatenate %254, %255, %256, %257, %258, %259, %260, %261 in 0 : vector<1x8x16xf32>, vector<1x8x16xf32>, vector<1x8x16xf32>, vector<1x8x16xf32>, vector<1x8x16xf32>, vector<1x8x16xf32>, vector<1x8x16xf32>, vector<1x8x16xf32> -> vector<8x8x16xf32>
    %263 = arith.truncf %262 : vector<8x8x16xf32> to vector<8x8x16xbf16>
    %264 = vector.shape_cast %230 : vector<8x16xf32> to vector<1x8x16xf32>
    %265 = vector.shape_cast %233 : vector<8x16xf32> to vector<1x8x16xf32>
    %266 = vector.shape_cast %236 : vector<8x16xf32> to vector<1x8x16xf32>
    %267 = vector.shape_cast %239 : vector<8x16xf32> to vector<1x8x16xf32>
    %268 = vector.shape_cast %243 : vector<8x16xf32> to vector<1x8x16xf32>
    %269 = vector.shape_cast %246 : vector<8x16xf32> to vector<1x8x16xf32>
    %270 = vector.shape_cast %249 : vector<8x16xf32> to vector<1x8x16xf32>
    %271 = vector.shape_cast %252 : vector<8x16xf32> to vector<1x8x16xf32>
    %272 = tpu.concatenate %264, %265, %266, %267, %268, %269, %270, %271 in 0 : vector<1x8x16xf32>, vector<1x8x16xf32>, vector<1x8x16xf32>, vector<1x8x16xf32>, vector<1x8x16xf32>, vector<1x8x16xf32>, vector<1x8x16xf32>, vector<1x8x16xf32> -> vector<8x8x16xf32>
    %273 = arith.truncf %272 : vector<8x8x16xf32> to vector<8x8x16xbf16>
    %274 = vector.shape_cast %231 : vector<8x16xf32> to vector<1x8x16xf32>
    %275 = vector.shape_cast %234 : vector<8x16xf32> to vector<1x8x16xf32>
    %276 = vector.shape_cast %237 : vector<8x16xf32> to vector<1x8x16xf32>
    %277 = vector.shape_cast %240 : vector<8x16xf32> to vector<1x8x16xf32>
    %278 = vector.shape_cast %244 : vector<8x16xf32> to vector<1x8x16xf32>
    %279 = vector.shape_cast %247 : vector<8x16xf32> to vector<1x8x16xf32>
    %280 = vector.shape_cast %250 : vector<8x16xf32> to vector<1x8x16xf32>
    %281 = vector.shape_cast %253 : vector<8x16xf32> to vector<1x8x16xf32>
    %282 = tpu.concatenate %274, %275, %276, %277, %278, %279, %280, %281 in 0 : vector<1x8x16xf32>, vector<1x8x16xf32>, vector<1x8x16xf32>, vector<1x8x16xf32>, vector<1x8x16xf32>, vector<1x8x16xf32>, vector<1x8x16xf32>, vector<1x8x16xf32> -> vector<8x8x16xf32>
    %283 = arith.truncf %282 : vector<8x8x16xf32> to vector<8x8x16xbf16>
    "tpu.trace_start"() <{level = 10 : i32, message = "nqd,nkd->nqk"}> : () -> ()
    %cst_76 = arith.constant dense<0.000000e+00> : vector<8x8x8xf32>
    %284 = tpu.matmul %263, %273, %cst_76 {dimension_numbers = #tpu.dot_dimension_numbers<[2], [2], [1], [1], [0, 0, 0, 1, 1, 1], [0], [0]>} : vector<8x8x16xbf16>, vector<8x8x16xbf16>, vector<8x8x8xf32> -> vector<8x8x8xf32>
    "tpu.trace_stop"() : () -> ()
    %285 = arith.addf %284, %0 : vector<8x8x8xf32>
    %cst_77 = arith.constant dense<0xFF800000> : vector<8x8xf32>
    %286 = vector.multi_reduction <maximumf>, %285, %cst_77 [2] : vector<8x8x8xf32> to vector<8x8xf32>
    %287 = vector.shape_cast %286 : vector<8x8xf32> to vector<8x8x1xf32>
    %288 = vector.broadcast %287 : vector<8x8x1xf32> to vector<8x8x8xf32>
    %289 = arith.subf %285, %288 : vector<8x8x8xf32>
    %290 = math.exp %289 : vector<8x8x8xf32>
    %cst_78 = arith.constant dense<0.000000e+00> : vector<8x8xf32>
    %291 = vector.multi_reduction <add>, %290, %cst_78 [2] : vector<8x8x8xf32> to vector<8x8xf32>
    %292 = vector.shape_cast %291 : vector<8x8xf32> to vector<8x8x1xf32>
    %293 = tpu.reciprocal %292 {approx = true} : vector<8x8x1xf32> -> vector<8x8x1xf32>
    %294 = vector.broadcast %293 : vector<8x8x1xf32> to vector<8x8x8xf32>
    %295 = arith.mulf %290, %294 : vector<8x8x8xf32>
    %296 = arith.truncf %295 : vector<8x8x8xf32> to vector<8x8x8xbf16>
    "tpu.trace_start"() <{level = 10 : i32, message = "nqk,nkd->nqd"}> : () -> ()
    %cst_79 = arith.constant dense<0.000000e+00> : vector<8x8x16xf32>
    %297 = tpu.matmul %296, %283, %cst_79 {dimension_numbers = #tpu.dot_dimension_numbers<[2], [1], [1], [2], [0, 0, 0, 1, 1, 2], [0], [0]>} : vector<8x8x8xbf16>, vector<8x8x16xbf16>, vector<8x8x16xf32> -> vector<8x8x16xf32>
    "tpu.trace_stop"() : () -> ()
    %298 = vector.extract_strided_slice %297 {offsets = [0, 0, 0], sizes = [1, 8, 16], strides = [1, 1, 1]} : vector<8x8x16xf32> to vector<1x8x16xf32>
    %299 = vector.shape_cast %298 : vector<1x8x16xf32> to vector<8x16xf32>
    %300 = vector.extract_strided_slice %297 {offsets = [1, 0, 0], sizes = [1, 8, 16], strides = [1, 1, 1]} : vector<8x8x16xf32> to vector<1x8x16xf32>
    %301 = vector.shape_cast %300 : vector<1x8x16xf32> to vector<8x16xf32>
    %302 = vector.extract_strided_slice %297 {offsets = [2, 0, 0], sizes = [1, 8, 16], strides = [1, 1, 1]} : vector<8x8x16xf32> to vector<1x8x16xf32>
    %303 = vector.shape_cast %302 : vector<1x8x16xf32> to vector<8x16xf32>
    %304 = vector.extract_strided_slice %297 {offsets = [3, 0, 0], sizes = [1, 8, 16], strides = [1, 1, 1]} : vector<8x8x16xf32> to vector<1x8x16xf32>
    %305 = vector.shape_cast %304 : vector<1x8x16xf32> to vector<8x16xf32>
    %306 = tpu.concatenate %299, %301, %303, %305 in 1 : vector<8x16xf32>, vector<8x16xf32>, vector<8x16xf32>, vector<8x16xf32> -> vector<8x64xf32>
    %307 = vector.extract_strided_slice %297 {offsets = [4, 0, 0], sizes = [1, 8, 16], strides = [1, 1, 1]} : vector<8x8x16xf32> to vector<1x8x16xf32>
    %308 = vector.shape_cast %307 : vector<1x8x16xf32> to vector<8x16xf32>
    %309 = vector.extract_strided_slice %297 {offsets = [5, 0, 0], sizes = [1, 8, 16], strides = [1, 1, 1]} : vector<8x8x16xf32> to vector<1x8x16xf32>
    %310 = vector.shape_cast %309 : vector<1x8x16xf32> to vector<8x16xf32>
    %311 = vector.extract_strided_slice %297 {offsets = [6, 0, 0], sizes = [1, 8, 16], strides = [1, 1, 1]} : vector<8x8x16xf32> to vector<1x8x16xf32>
    %312 = vector.shape_cast %311 : vector<1x8x16xf32> to vector<8x16xf32>
    %313 = vector.extract_strided_slice %297 {offsets = [7, 0, 0], sizes = [1, 8, 16], strides = [1, 1, 1]} : vector<8x8x16xf32> to vector<1x8x16xf32>
    %314 = vector.shape_cast %313 : vector<1x8x16xf32> to vector<8x16xf32>
    %315 = tpu.concatenate %308, %310, %312, %314 in 1 : vector<8x16xf32>, vector<8x16xf32>, vector<8x16xf32>, vector<8x16xf32> -> vector<8x64xf32>
    %316 = tpu.concatenate %306, %315 in 0 : vector<8x64xf32>, vector<8x64xf32> -> vector<16x64xf32>
    %c1_80 = arith.constant 1 : index
    %c0_81 = arith.constant 0 : index
    %c0_82 = arith.constant 0 : index
    %317 = vector.load %arg7[%c1_80, %c0_81, %c0_82] : memref<2x64x64xbf16, #tpu.memory_space<vmem>>, vector<1x64x64xbf16>
    %318 = vector.shape_cast %317 : vector<1x64x64xbf16> to vector<64x64xbf16>
    %319 = arith.truncf %316 : vector<16x64xf32> to vector<16x64xbf16>
    %cst_83 = arith.constant dense<0.000000e+00> : vector<16x64xf32>
    %320 = tpu.matmul %319, %318, %cst_83 {dimension_numbers = #tpu.dot_dimension_numbers<[1], [0], [0], [1], [0, 0, 1, 1], [], []>} : vector<16x64xbf16>, vector<64x64xbf16>, vector<16x64xf32> -> vector<16x64xf32>
    %c1_84 = arith.constant 1 : index
    %c0_85 = arith.constant 0 : index
    %c0_86 = arith.constant 0 : index
    %321 = vector.load %arg8[%c1_84, %c0_85, %c0_86] : memref<2x1x64xf32, #tpu.memory_space<vmem>>, vector<1x1x64xf32>
    %322 = vector.shape_cast %321 : vector<1x1x64xf32> to vector<1x64xf32>
    %323 = vector.broadcast %322 : vector<1x64xf32> to vector<16x64xf32>
    %324 = arith.addf %320, %323 : vector<16x64xf32>
    %325 = arith.addf %324, %219 : vector<16x64xf32>
    %c1_87 = arith.constant 1 : index
    %c0_88 = arith.constant 0 : index
    %c0_89 = arith.constant 0 : index
    %326 = vector.load %arg9[%c1_87, %c0_88, %c0_89] : memref<2x1x64xf32, #tpu.memory_space<vmem>>, vector<1x1x64xf32>
    %327 = vector.shape_cast %326 : vector<1x1x64xf32> to vector<1x64xf32>
    %c1_90 = arith.constant 1 : index
    %c0_91 = arith.constant 0 : index
    %c0_92 = arith.constant 0 : index
    %328 = vector.load %arg10[%c1_90, %c0_91, %c0_92] : memref<2x1x64xf32, #tpu.memory_space<vmem>>, vector<1x1x64xf32>
    %329 = vector.shape_cast %328 : vector<1x1x64xf32> to vector<1x64xf32>
    %cst_93 = arith.constant dense<0.000000e+00> : vector<16xf32>
    %330 = vector.multi_reduction <add>, %325, %cst_93 [1] : vector<16x64xf32> to vector<16xf32>
    %331 = vector.shape_cast %330 : vector<16xf32> to vector<16x1xf32>
    %cst_94 = arith.constant 6.400000e+01 : f32
    %332 = vector.broadcast %cst_94 : f32 to vector<16x1xf32>
    %333 = arith.divf %331, %332 : vector<16x1xf32>
    %334 = vector.broadcast %333 : vector<16x1xf32> to vector<16x64xf32>
    %335 = arith.subf %325, %334 : vector<16x64xf32>
    %336 = vector.broadcast %333 : vector<16x1xf32> to vector<16x64xf32>
    %337 = arith.subf %325, %336 : vector<16x64xf32>
    %338 = arith.mulf %335, %337 : vector<16x64xf32>
    %cst_95 = arith.constant dense<0.000000e+00> : vector<16xf32>
    %339 = vector.multi_reduction <add>, %338, %cst_95 [1] : vector<16x64xf32> to vector<16xf32>
    %340 = vector.shape_cast %339 : vector<16xf32> to vector<16x1xf32>
    %cst_96 = arith.constant 6.400000e+01 : f32
    %341 = vector.broadcast %cst_96 : f32 to vector<16x1xf32>
    %342 = arith.divf %340, %341 : vector<16x1xf32>
    %343 = vector.broadcast %333 : vector<16x1xf32> to vector<16x64xf32>
    %344 = arith.subf %325, %343 : vector<16x64xf32>
    %cst_97 = arith.constant 9.99999996E-13 : f32
    %345 = vector.broadcast %cst_97 : f32 to vector<16x1xf32>
    %346 = arith.addf %342, %345 : vector<16x1xf32>
    %347 = math.rsqrt %346 : vector<16x1xf32>
    %348 = vector.broadcast %347 : vector<16x1xf32> to vector<16x64xf32>
    %349 = arith.mulf %344, %348 : vector<16x64xf32>
    %350 = vector.broadcast %327 : vector<1x64xf32> to vector<16x64xf32>
    %351 = arith.mulf %349, %350 : vector<16x64xf32>
    %352 = vector.broadcast %329 : vector<1x64xf32> to vector<16x64xf32>
    %353 = arith.addf %351, %352 : vector<16x64xf32>
    %c1_98 = arith.constant 1 : index
    %c0_99 = arith.constant 0 : index
    %c0_100 = arith.constant 0 : index
    %354 = vector.load %arg11[%c1_98, %c0_99, %c0_100] : memref<2x64x128xbf16, #tpu.memory_space<vmem>>, vector<1x64x128xbf16>
    %355 = vector.shape_cast %354 : vector<1x64x128xbf16> to vector<64x128xbf16>
    %356 = arith.truncf %353 : vector<16x64xf32> to vector<16x64xbf16>
    %cst_101 = arith.constant dense<0.000000e+00> : vector<16x128xf32>
    %357 = tpu.matmul %356, %355, %cst_101 {dimension_numbers = #tpu.dot_dimension_numbers<[1], [0], [0], [1], [0, 0, 1, 1], [], []>} : vector<16x64xbf16>, vector<64x128xbf16>, vector<16x128xf32> -> vector<16x128xf32>
    %c1_102 = arith.constant 1 : index
    %c0_103 = arith.constant 0 : index
    %c0_104 = arith.constant 0 : index
    %358 = vector.load %arg12[%c1_102, %c0_103, %c0_104] : memref<2x1x128xf32, #tpu.memory_space<vmem>>, vector<1x1x128xf32>
    %359 = vector.shape_cast %358 : vector<1x1x128xf32> to vector<1x128xf32>
    %360 = vector.broadcast %359 : vector<1x128xf32> to vector<16x128xf32>
    %361 = arith.addf %357, %360 : vector<16x128xf32>
    %cst_105 = arith.constant 5.000000e-01 : f32
    %362 = vector.broadcast %cst_105 : f32 to vector<16x128xf32>
    %363 = arith.mulf %362, %361 : vector<16x128xf32>
    %cst_106 = arith.constant 4.471500e-02 : f32
    %364 = vector.broadcast %cst_106 : f32 to vector<16x128xf32>
    %365 = arith.mulf %364, %361 : vector<16x128xf32>
    %366 = arith.mulf %365, %361 : vector<16x128xf32>
    %367 = arith.mulf %366, %361 : vector<16x128xf32>
    %368 = arith.addf %361, %367 : vector<16x128xf32>
    %cst_107 = arith.constant 0.797884583 : f32
    %369 = vector.broadcast %cst_107 : f32 to vector<16x128xf32>
    %370 = arith.mulf %369, %368 : vector<16x128xf32>
    %371 = math.tanh %370 : vector<16x128xf32>
    %cst_108 = arith.constant 1.000000e+00 : f32
    %372 = vector.broadcast %cst_108 : f32 to vector<16x128xf32>
    %373 = arith.addf %372, %371 : vector<16x128xf32>
    %374 = arith.mulf %363, %373 : vector<16x128xf32>
    %c1_109 = arith.constant 1 : index
    %c0_110 = arith.constant 0 : index
    %c0_111 = arith.constant 0 : index
    %375 = vector.load %arg13[%c1_109, %c0_110, %c0_111] : memref<2x128x64xbf16, #tpu.memory_space<vmem>>, vector<1x128x64xbf16>
    %376 = vector.shape_cast %375 : vector<1x128x64xbf16> to vector<128x64xbf16>
    %377 = arith.truncf %374 : vector<16x128xf32> to vector<16x128xbf16>
    %cst_112 = arith.constant dense<0.000000e+00> : vector<16x64xf32>
    %378 = tpu.matmul %377, %376, %cst_112 {dimension_numbers = #tpu.dot_dimension_numbers<[1], [0], [0], [1], [0, 0, 1, 1], [], []>} : vector<16x128xbf16>, vector<128x64xbf16>, vector<16x64xf32> -> vector<16x64xf32>
    %c1_113 = arith.constant 1 : index
    %c0_114 = arith.constant 0 : index
    %c0_115 = arith.constant 0 : index
    %379 = vector.load %arg14[%c1_113, %c0_114, %c0_115] : memref<2x1x64xf32, #tpu.memory_space<vmem>>, vector<1x1x64xf32>
    %380 = vector.shape_cast %379 : vector<1x1x64xf32> to vector<1x64xf32>
    %381 = vector.broadcast %380 : vector<1x64xf32> to vector<16x64xf32>
    %382 = arith.addf %378, %381 : vector<16x64xf32>
    %383 = arith.addf %382, %353 : vector<16x64xf32>
    %c1_116 = arith.constant 1 : index
    %c0_117 = arith.constant 0 : index
    %c0_118 = arith.constant 0 : index
    %384 = vector.load %arg15[%c1_116, %c0_117, %c0_118] : memref<2x1x64xf32, #tpu.memory_space<vmem>>, vector<1x1x64xf32>
    %385 = vector.shape_cast %384 : vector<1x1x64xf32> to vector<1x64xf32>
    %c1_119 = arith.constant 1 : index
    %c0_120 = arith.constant 0 : index
    %c0_121 = arith.constant 0 : index
    %386 = vector.load %arg16[%c1_119, %c0_120, %c0_121] : memref<2x1x64xf32, #tpu.memory_space<vmem>>, vector<1x1x64xf32>
    %387 = vector.shape_cast %386 : vector<1x1x64xf32> to vector<1x64xf32>
    %cst_122 = arith.constant dense<0.000000e+00> : vector<16xf32>
    %388 = vector.multi_reduction <add>, %383, %cst_122 [1] : vector<16x64xf32> to vector<16xf32>
    %389 = vector.shape_cast %388 : vector<16xf32> to vector<16x1xf32>
    %cst_123 = arith.constant 6.400000e+01 : f32
    %390 = vector.broadcast %cst_123 : f32 to vector<16x1xf32>
    %391 = arith.divf %389, %390 : vector<16x1xf32>
    %392 = vector.broadcast %391 : vector<16x1xf32> to vector<16x64xf32>
    %393 = arith.subf %383, %392 : vector<16x64xf32>
    %394 = vector.broadcast %391 : vector<16x1xf32> to vector<16x64xf32>
    %395 = arith.subf %383, %394 : vector<16x64xf32>
    %396 = arith.mulf %393, %395 : vector<16x64xf32>
    %cst_124 = arith.constant dense<0.000000e+00> : vector<16xf32>
    %397 = vector.multi_reduction <add>, %396, %cst_124 [1] : vector<16x64xf32> to vector<16xf32>
    %398 = vector.shape_cast %397 : vector<16xf32> to vector<16x1xf32>
    %cst_125 = arith.constant 6.400000e+01 : f32
    %399 = vector.broadcast %cst_125 : f32 to vector<16x1xf32>
    %400 = arith.divf %398, %399 : vector<16x1xf32>
    %401 = vector.broadcast %391 : vector<16x1xf32> to vector<16x64xf32>
    %402 = arith.subf %383, %401 : vector<16x64xf32>
    %cst_126 = arith.constant 9.99999996E-13 : f32
    %403 = vector.broadcast %cst_126 : f32 to vector<16x1xf32>
    %404 = arith.addf %400, %403 : vector<16x1xf32>
    %405 = math.rsqrt %404 : vector<16x1xf32>
    %406 = vector.broadcast %405 : vector<16x1xf32> to vector<16x64xf32>
    %407 = arith.mulf %402, %406 : vector<16x64xf32>
    %408 = vector.broadcast %385 : vector<1x64xf32> to vector<16x64xf32>
    %409 = arith.mulf %407, %408 : vector<16x64xf32>
    %410 = vector.broadcast %387 : vector<1x64xf32> to vector<16x64xf32>
    %411 = arith.addf %409, %410 : vector<16x64xf32>
    %c0_127 = arith.constant 0 : index
    %c0_128 = arith.constant 0 : index
    %412 = vector.load %arg17[%c0_127, %c0_128] : memref<64x128xbf16, #tpu.memory_space<vmem>>, vector<64x128xbf16>
    %413 = arith.truncf %411 : vector<16x64xf32> to vector<16x64xbf16>
    %cst_129 = arith.constant dense<0.000000e+00> : vector<16x128xf32>
    %414 = tpu.matmul %413, %412, %cst_129 {dimension_numbers = #tpu.dot_dimension_numbers<[1], [0], [0], [1], [0, 0, 1, 1], [], []>} : vector<16x64xbf16>, vector<64x128xbf16>, vector<16x128xf32> -> vector<16x128xf32>
    %c0_130 = arith.constant 0 : index
    %c0_131 = arith.constant 0 : index
    %415 = vector.load %arg18[%c0_130, %c0_131] : memref<1x128xf32, #tpu.memory_space<vmem>>, vector<1x128xf32>
    %416 = vector.broadcast %415 : vector<1x128xf32> to vector<16x128xf32>
    %417 = arith.addf %414, %416 : vector<16x128xf32>
    %c0_132 = arith.constant 0 : index
    %c0_133 = arith.constant 0 : index
    %418 = vector.load %arg19[%c0_132, %c0_133] : memref<16x128xf32, #tpu.memory_space<vmem>>, vector<16x128xf32>
    tpu.vector_store %arg19[%c0_132, %c0_133], %417 {strides = array<i32>} : memref<16x128xf32, #tpu.memory_space<vmem>>, vector<16x128xf32>,
    return
  }
  func.func @transform_0(%arg0: i32) -> (i32, i32) {
    %c0_i32 = arith.constant 0 : i32
    %c0_i32_0 = arith.constant 0 : i32
    %c0_i32_1 = arith.constant 0 : i32
    return %c0_i32, %c0_i32_0 : i32, i32
  }
  func.func @transform_1(%arg0: i32) -> (i32, i32, i32) {
    %c0_i32 = arith.constant 0 : i32
    %c0_i32_0 = arith.constant 0 : i32
    %c0_i32_1 = arith.constant 0 : i32
    %c0_i32_2 = arith.constant 0 : i32
    return %c0_i32, %c0_i32_0, %c0_i32_1 : i32, i32, i32
  }
  func.func @transform_2(%arg0: i32) -> (i32, i32) {
    %c0_i32 = arith.constant 0 : i32
    %c0_i32_0 = arith.constant 0 : i32
    %c0_i32_1 = arith.constant 0 : i32
    return %c0_i32, %c0_i32_0 : i32, i32
  }
  func.func @transform_3(%arg0: i32) -> (i32, i32) {
    %c0_i32 = arith.constant 0 : i32
    %c0_i32_0 = arith.constant 0 : i32
    %c0_i32_1 = arith.constant 0 : i32
    return %c0_i32, %c0_i32_0 : i32, i32
  }
  func.func @transform_4(%arg0: i32) -> (i32, i32, i32) {
    %c0_i32 = arith.constant 0 : i32
    %c0_i32_0 = arith.constant 0 : i32
    %c0_i32_1 = arith.constant 0 : i32
    %c0_i32_2 = arith.constant 0 : i32
    return %c0_i32, %c0_i32_0, %c0_i32_1 : i32, i32, i32
  }
  func.func @transform_5(%arg0: i32) -> (i32, i32, i32) {
    %c0_i32 = arith.constant 0 : i32
    %c0_i32_0 = arith.constant 0 : i32
    %c0_i32_1 = arith.constant 0 : i32
    %c0_i32_2 = arith.constant 0 : i32
    return %c0_i32, %c0_i32_0, %c0_i32_1 : i32, i32, i32
  }
  func.func @transform_6(%arg0: i32) -> (i32, i32, i32) {
    %c0_i32 = arith.constant 0 : i32
    %c0_i32_0 = arith.constant 0 : i32
    %c0_i32_1 = arith.constant 0 : i32
    %c0_i32_2 = arith.constant 0 : i32
    return %c0_i32, %c0_i32_0, %c0_i32_1 : i32, i32, i32
  }
  func.func @transform_7(%arg0: i32) -> (i32, i32, i32) {
    %c0_i32 = arith.constant 0 : i32
    %c0_i32_0 = arith.constant 0 : i32
    %c0_i32_1 = arith.constant 0 : i32
    %c0_i32_2 = arith.constant 0 : i32
    return %c0_i32, %c0_i32_0, %c0_i32_1 : i32, i32, i32
  }
  func.func @transform_8(%arg0: i32) -> (i32, i32, i32) {
    %c0_i32 = arith.constant 0 : i32
    %c0_i32_0 = arith.constant 0 : i32
    %c0_i32_1 = arith.constant 0 : i32
    %c0_i32_2 = arith.constant 0 : i32
    return %c0_i32, %c0_i32_0, %c0_i32_1 : i32, i32, i32
  }
  func.func @transform_9(%arg0: i32) -> (i32, i32, i32) {
    %c0_i32 = arith.constant 0 : i32
    %c0_i32_0 = arith.constant 0 : i32
    %c0_i32_1 = arith.constant 0 : i32
    %c0_i32_2 = arith.constant 0 : i32
    return %c0_i32, %c0_i32_0, %c0_i32_1 : i32, i32, i32
  }
  func.func @transform_10(%arg0: i32) -> (i32, i32, i32) {
    %c0_i32 = arith.constant 0 : i32
    %c0_i32_0 = arith.constant 0 : i32
    %c0_i32_1 = arith.constant 0 : i32
    %c0_i32_2 = arith.constant 0 : i32
    return %c0_i32, %c0_i32_0, %c0_i32_1 : i32, i32, i32
  }
  func.func @transform_11(%arg0: i32) -> (i32, i32, i32) {
    %c0_i32 = arith.constant 0 : i32
    %c0_i32_0 = arith.constant 0 : i32
    %c0_i32_1 = arith.constant 0 : i32
    %c0_i32_2 = arith.constant 0 : i32
    return %c0_i32, %c0_i32_0, %c0_i32_1 : i32, i32, i32
  }
  func.func @transform_12(%arg0: i32) -> (i32, i32, i32) {
    %c0_i32 = arith.constant 0 : i32
    %c0_i32_0 = arith.constant 0 : i32
    %c0_i32_1 = arith.constant 0 : i32
    %c0_i32_2 = arith.constant 0 : i32
    return %c0_i32, %c0_i32_0, %c0_i32_1 : i32, i32, i32
  }
  func.func @transform_13(%arg0: i32) -> (i32, i32, i32) {
    %c0_i32 = arith.constant 0 : i32
    %c0_i32_0 = arith.constant 0 : i32
    %c0_i32_1 = arith.constant 0 : i32
    %c0_i32_2 = arith.constant 0 : i32
    return %c0_i32, %c0_i32_0, %c0_i32_1 : i32, i32, i32
  }
  func.func @transform_14(%arg0: i32) -> (i32, i32, i32) {
    %c0_i32 = arith.constant 0 : i32
    %c0_i32_0 = arith.constant 0 : i32
    %c0_i32_1 = arith.constant 0 : i32
    %c0_i32_2 = arith.constant 0 : i32
    return %c0_i32, %c0_i32_0, %c0_i32_1 : i32, i32, i32
  }
  func.func @transform_15(%arg0: i32) -> (i32, i32, i32) {
    %c0_i32 = arith.constant 0 : i32
    %c0_i32_0 = arith.constant 0 : i32
    %c0_i32_1 = arith.constant 0 : i32
    %c0_i32_2 = arith.constant 0 : i32
    return %c0_i32, %c0_i32_0, %c0_i32_1 : i32, i32, i32
  }
  func.func @transform_16(%arg0: i32) -> (i32, i32) {
    %c0_i32 = arith.constant 0 : i32
    %c0_i32_0 = arith.constant 0 : i32
    %c0_i32_1 = arith.constant 0 : i32
    return %c0_i32, %c0_i32_0 : i32, i32
  }
  func.func @transform_17(%arg0: i32) -> (i32, i32) {
    %c0_i32 = arith.constant 0 : i32
    %c0_i32_0 = arith.constant 0 : i32
    %c0_i32_1 = arith.constant 0 : i32
    return %c0_i32, %c0_i32_0 : i32, i32
  }
  func.func @transform_18(%arg0: i32) -> (i32, i32) {
    %c0_i32 = arith.constant 0 : i32
    %c0_i32_0 = arith.constant 0 : i32
    %c0_i32_1 = arith.constant 0 : i32
    return %c0_i32, %c0_i32_0 : i32, i32
  }
}

</mosaic_0001>

<bundles_post_ra>
// kernel: bert_intent_slot_forward.1
= control target key start
LH: loop header
LB: loop body
LE: loop exit
PB: predicated region body
PF: predicated region fallthrough
CT: control target
= control target key end

     0   :  { %vm72_vm0 = vcmask 523264   ;;  %v3858_v22 = vmov 0   ;;  %v127_v40 = vlaneseq  ;;  %v3859_v46 = vmov 0.0   ;;  %s3861_s27 = smov 112   ;;  %s3863_s28 = smov 80   ;;  %s4716_s0 = inlined_call_operand.vmem [shape: f32[16,64], index: 0, kind: input, shape index: {}]   ;;  %s4717_s4 = inlined_call_operand.vmem [shape: bf16[2,64,192], index: 4, kind: input, shape index: {}]   ;;  %s4718_s2 = inlined_call_operand.vmem [shape: f32[1,64], index: 2, kind: input, shape index: {}]   ;;  %s4719_s3 = inlined_call_operand.vmem [shape: f32[1,64], index: 3, kind: input, shape index: {}]   ;;  %s4720_s5 = inlined_call_operand.vmem [shape: f32[2,1,192], index: 5, kind: input, shape index: {}]   ;;  %s4721_s1 = inlined_call_operand.vmem [shape: f32[8,8,8], index: 1, kind: input, shape index: {}]   ;;  %s4722_s6 = inlined_call_operand.vmem [shape: bf16[2,64,64], index: 6, kind: input, shape index: {}]   ;;  %s4723_s7 = inlined_call_operand.vmem [shape: f32[2,1,64], index: 7, kind: input, shape index: {}]   ;;  %s4724_s10 = inlined_call_operand.vmem [shape: bf16[2,64,128], index: 10, kind: input, shape index: {}]   ;;  %s4725_s8 = inlined_call_operand.vmem [shape: f32[2,1,64], index: 8, kind: input, shape index: {}]   ;;  %s4726_s9 = inlined_call_operand.vmem [shape: f32[2,1,64], index: 9, kind: input, shape index: {}]   ;;  %s4727_s12 = inlined_call_operand.vmem [shape: bf16[2,128,64], index: 12, kind: input, shape index: {}]   ;;  %s4728_s11 = inlined_call_operand.vmem [shape: f32[2,1,128], index: 11, kind: input, shape index: {}]   ;;  %s4729_s13 = inlined_call_operand.vmem [shape: f32[2,1,64], index: 13, kind: input, shape index: {}]   ;;  %s4730_s14 = inlined_call_operand.vmem [shape: f32[2,1,64], index: 14, kind: input, shape index: {}]   ;;  %s4731_s15 = inlined_call_operand.vmem [shape: f32[2,1,64], index: 15, kind: input, shape index: {}]   ;;  %s4732_s16 = inlined_call_operand.vmem [shape: bf16[64,128], index: 16, kind: input, shape index: {}]   ;;  %s4733_s17 = inlined_call_operand.vmem [shape: f32[1,128], index: 17, kind: input, shape index: {}]   ;;  %s4734_s18 = inlined_call_operand.vmem [shape: f32[16,128], index: 18, kind: output, shape index: {}]  }
   0x1   :  { %4739 = sst [smem:[#allocation2_spill]] %s4716_s0  ;;  %212 = vmatprep.mubr.bf16.mxu0 %v3858_v22  ;;  %v3104_v35 = vld [vmem:[%s4719_s3] ss:$0 sm:$0xff]  ;;  %3366 = vmatprep.subr.bf16.mxu1 %v3859_v46  ;;  %s3860_s3 = smov 96   ;;  %vm3862_vm1 = vmmov 0   ;;  %vm282_vm2 = vcmask 130048  }
   0x2   :  { %4740 = sst [smem:[#allocation3_spill]] %s4717_s4  ;;  %s4742_s29 = sld [smem:[#allocation2_spill]]  ;;  %v4011_v41 = vshrl.u32 %v127_v40, 7  ;;  %v125_v43 = vld [vmem:[%s4720_s5] sm:$0x3]  ;;  %3368 = vmatprep.mubr.msk.bf16.mxu1 %vm3862_vm1, %v3859_v46  ;;  %vm772_vm3 = vcmask 1043456  }
   0x3   :  { %4741 = sst [smem:[#allocation4_spill]] %s4718_s2  ;;  %s4743_s20 = sld [smem:[#allocation3_spill]]  ;;  %vm672_vm4 = vcmask 64512   ;;  %vm1151_vm5 = vcmask 261120   ;;  %vm1153_vm6 = vcmask 392192  }
   0x4   :  { %s4744_s2 = sld [smem:[#allocation4_spill]]  ;;  %v129_v42 = vsub.s32 0, %v4011_v41  ;;  %v133_v45 = vsub.s32 1, %v4011_v41  ;;  %s4737_s23 = smov 32  }
   0x5   :  { %s3866_s4 = smov 16   ;;  %s4738_s21 = smov 48  }
   0x6   :  { %v130_v44 = vrot.slane %v125_v43, %v129_v42  ;;  %v134_v50 = vrot.slane %v125_v43, %v133_v45 }
   0x8   :  { %v68_v0 = vld [vmem:[%s4742_s29] sm:$0xff]  ;;  %v69_v1 = vld [vmem:[%s4742_s29 + $0x8] sm:$0xff]  ;;  %s3864_s29 = smov 64  }
   0x9   :  { %v73_v2 = vsel %vm72_vm0, %v68_v0, 0.0  ;;  %v76_v3 = vsel %vm72_vm0, %v69_v1, 0.0  ;;  %v3698_v14 = vld [vmem:[%s4743_s20 + $0x4] ss:$8 sps:$4 sm:$0xff]   ;;  %v3700_v15 = vld [vmem:[%s4743_s20] ss:$8 sps:$4 sm:$0xff]  }
   0xa   :  { %74 = vadd.xlane.f32.xlu0 %v73_v2  ;;  %180 = vmatprep.subr.bf16.mxu0 %v3698_v14  ;;  %v3701_v16 = vld [vmem:[%s4743_s20 + $0x14] ss:$8 sps:$4 sm:$0xff]   ;;  %v3703_v17 = vld [vmem:[%s4743_s20 + $0x10] ss:$8 sps:$4 sm:$0xff]   ;;  %v3704_v18 = vld [vmem:[%s4743_s20 + $0x24] ss:$8 sps:$4 sm:$0xff]  }
   0xb   :  { %181 = vmatpush1.bf16.msra.mxu0 %v3700_v15  ;;  %v3706_v19 = vld [vmem:[%s4743_s20 + $0x20] ss:$8 sps:$4 sm:$0xff]   ;;  %v3707_v20 = vld [vmem:[%s4743_s20 + $0x34] ss:$8 sps:$4 sm:$0xff]   ;;  %v3709_v21 = vld [vmem:[%s4743_s20 + $0x30] ss:$8 sps:$4 sm:$0xff]  }
   0xc   :  { %182 = vmatprep.subr.bf16.mxu0 %v3701_v16  ;;  %v3103_v31 = vld [vmem:[%s4744_s2] ss:$0 sm:$0xff] }
   0xe   :  { %77 = vadd.xlane.f32.xlu0 %v76_v3 }
   0xf   :  { %183 = vmatpush1.bf16.msra.mxu0 %v3703_v17 }
  0x10   :  { %184 = vmatprep.subr.bf16.mxu0 %v3704_v18 }
  0x13   :  { %185 = vmatpush1.bf16.msra.mxu0 %v3706_v19 }
  0x14   :  { %186 = vmatprep.subr.bf16.mxu0 %v3707_v20 }
  0x17   :  { %187 = vmatpush1.bf16.msra.mxu0 %v3709_v21 }
  0x18   :  { %3390 = vmatprep.subr.bf16.mxu0 %v3859_v46 }
  0x97   :  { %v75_v4 = vpop.xlane.xlu0 %74 }
  0x98   :  { %v80_v5 = vmul.f32 0.015625, %v75_v4 }
  0x9a   :  { %v82_v6 = vsub.f32 %v68_v0, %v80_v5 }
  0x9b   :  { %v78_v7 = vpop.xlane.xlu0 %77 }
  0x9c   :  { %v81_v8 = vmul.f32 0.015625, %v78_v7  ;;  %v84_v9 = vmul.f32 %v82_v6, %v82_v6 }
  0x9e   :  { %v83_v10 = vsub.f32 %v69_v1, %v81_v8  ;;  %v86_v11 = vsel %vm72_vm0, %v84_v9, 0.0 }
  0x9f   :  { %87 = vadd.xlane.f32.xlu1 %v86_v11 }
  0xa0   :  { %v85_v12 = vmul.f32 %v83_v10, %v83_v10 }
  0xa2   :  { %v89_v13 = vsel %vm72_vm0, %v85_v12, 0.0 }
  0xa3   :  { %90 = vadd.xlane.f32.xlu1 %v89_v13 }
 0x12c   :  { %v88_v23 = vpop.xlane.xlu1 %87 }
 0x12d   :  { %v92_v24 = vmul.f32 0.015625, %v88_v23 }
 0x12f   :  { %v94_v25 = vadd.f32 1e-12, %v92_v24 }
 0x130   :  { %v91_v26 = vpop.xlane.xlu1 %90 }
 0x131   :  { %3758 = vrsqrt.f32 %v94_v25  ;;  %v93_v27 = vmul.f32 0.015625, %v91_v26  ;;  %v60_v25 = vld [vmem:[%s4721_s1] sm:$0xff] }
 0x133   :  { %v95_v28 = vadd.f32 1e-12, %v93_v27 }
 0x135   :  { %3760 = vrsqrt.f32 %v95_v28 }
 0x13b   :  { %v3759_v29 = vpop.eup %3758 }
 0x13c   :  { %v98_v30 = vmul.f32 %v3759_v29, %v82_v6 }
 0x13e   :  { %v106_v34 = vmul.f32 %v3103_v31, %v98_v30 }
 0x13f   :  { %v3761_v32 = vpop.eup %3760 }
 0x140   :  { %v99_v33 = vmul.f32 %v3761_v32, %v83_v10  ;;  %v4004_v37 = vadd.f32 %v3104_v35, %v106_v34  ;;  %v61_v32 = vld [vmem:[%s4721_s1 + $0x8] sm:$0xff] }
 0x142   :  { %v107_v36 = vmul.f32 %v3103_v31, %v99_v33 }
 0x144   :  { %v4006_v38 = vadd.f32 %v3104_v35, %v107_v36 }
 0x146   :  { %v124_v39 = vpack.c.bf16 %v4006_v38, %v4004_v37 }
 0x148   :  { %3113 = vmatmul.mubr.msk.bf16.vlgmr.msra.gmra.mrb[0].mxu0 %vm72_vm0, %v124_v39 }
 0x149   :  { %3392 = vmatprep.mubr.msk.bf16.mxu0 %vm3862_vm1, %v3859_v46 }
 0x21b   :  { %v214_v47 = vpop.f32.mrb[0].mxu0 }
 0x21c   :  { %v215_v48 = vadd.f32 %v214_v47, %v130_v44  ;;  %v4022_v49 = vpop.f32.mrb[1].mxu0 }
 0x21d   :  { %v218_v51 = vpop.f32.mrb[2].mxu0  ;;  %v4061_v14 = vadd.f32 %v4022_v49, %v134_v50 }
 0x21e   :  { %v220_v52 = vpop.f32.mrb[3].mxu0  ;;  %227 = vrot.lane.b32.xlu1 %v215_v48, %s3860_s3  ;;  %224 = vrot.lane.b32.xlu0 %v215_v48, %s3861_s27  ;;  %v219_v54 = vadd.f32 %v218_v51, %v130_v44  ;;  %v243_v55 = vpack.c.bf16 %v215_v48, %v215_v48 }
 0x21f   :  { %v4028_v53 = vadd.f32 %v220_v52, %v134_v50  ;;  %v271_v18 = vpack.c.bf16 %v4061_v14, %v4061_v14 }
 0x220   :  { %v247_v63 = vpack.c.bf16 %v219_v54, %v219_v54 }
 0x221   :  { %v774_v19 = vsel %vm772_vm3, %v271_v18, 0  ;;  %v67_v18 = vld [vmem:[%s4721_s1 + $0x38] sm:$0xff] }
 0x222   :  { %230 = vrot.lane.b32.xlu1 %v215_v48, %s3863_s28  ;;  %237 = vrot.lane.b32.xlu0 %v219_v54, %s3860_s3  ;;  %v62_v48 = vld [vmem:[%s4721_s1 + $0x10] sm:$0xff] }
 0x226   :  { %234 = vrot.lane.b32.xlu1 %v219_v54, %s3861_s27  ;;  %280 = vrot.lane.b32.xlu0 %v243_v55, %s3864_s29 }
 0x22a   :  { %240 = vrot.lane.b32.xlu1 %v219_v54, %s3863_s28 }
 0x290   :  { %v228_v56 = vpop.permute.xlu1 %227  ;;  %v225_v57 = vpop.permute.xlu0 %224 }
 0x291   :  { %v245_v58 = vpack.c.bf16 %v228_v56, %v228_v56  ;;  %v244_v59 = vpack.c.bf16 %v225_v57, %v225_v57 }
 0x293   :  { %330 = vrot.lane.b32.xlu1 %v244_v59, %s3864_s29  ;;  %379 = vrot.lane.b32.xlu0 %v245_v58, %s3864_s29 }
 0x294   :  { %v231_v60 = vpop.permute.xlu1 %230  ;;  %v238_v61 = vpop.permute.xlu0 %237 }
 0x295   :  { %v246_v62 = vpack.c.bf16 %v231_v60, %v231_v60  ;;  %v249_v2 = vpack.c.bf16 %v238_v61, %v238_v61  ;;  %v63_v60 = vld [vmem:[%s4721_s1 + $0x18] sm:$0xff] }
 0x297   :  { %428 = vrot.lane.b32.xlu1 %v246_v62, %s3864_s29  ;;  %477 = vrot.lane.b32.xlu0 %v247_v63, %s3864_s29 }
 0x298   :  { %v235_v0 = vpop.permute.xlu1 %234  ;;  %v281_v1 = vpop.permute.xlu0 %280 }
 0x299   :  { %v248_v3 = vpack.c.bf16 %v235_v0, %v235_v0  ;;  %v287_v4 = vsel %vm282_vm2, %v281_v1, 0 }
 0x29a   :  { %3367 = vmatpush3.bf16.xpose.msra.mxu1 %v287_v4 }
 0x29b   :  { %526 = vrot.lane.b32.xlu1 %v248_v3, %s3864_s29  ;;  %575 = vrot.lane.b32.xlu0 %v249_v2, %s3864_s29 }
 0x29c   :  { %v241_v5 = vpop.permute.xlu1 %240  ;;  %3372 = vmatprep.subr.bf16.mxu1 %v3859_v46 }
 0x29d   :  { %v250_v6 = vpack.c.bf16 %v241_v5, %v241_v5 }
 0x29f   :  { %624 = vrot.lane.b32.xlu1 %v250_v6, %s3864_s29 }
 0x2a1   :  { %3369 = vmatmul.mubr.msk.bf16.vlgmr.msra.gmra.mrb[0].mxu1 %vm282_vm2, %v243_v55 }
 0x2a2   :  { %3374 = vmatprep.mubr.msk.bf16.mxu1 %vm3862_vm1, %v3859_v46 }
 0x305   :  { %v331_v7 = vpop.permute.xlu1 %330  ;;  %v380_v8 = vpop.permute.xlu0 %379 }
 0x306   :  { %v336_v9 = vsel %vm282_vm2, %v331_v7, 0  ;;  %v385_v12 = vsel %vm282_vm2, %v380_v8, 0  ;;  %v65_v7 = vld [vmem:[%s4721_s1 + $0x28] sm:$0xff] }
 0x307   :  { %3373 = vmatpush3.bf16.xpose.msra.mxu1 %v336_v9 }
 0x308   :  { %3378 = vmatprep.subr.bf16.mxu1 %v3859_v46 }
 0x309   :  { %v478_v10 = vpop.permute.xlu0 %477  ;;  %v429_v16 = vpop.permute.xlu1 %428 }
 0x30a   :  { %v483_v11 = vsel %vm282_vm2, %v478_v10, 0  ;;  %v434_v17 = vsel %vm282_vm2, %v429_v16, 0 }
 0x30b   :  { %3391 = vmatpush3.bf16.xpose.msra.mxu0 %v483_v11 }
 0x30c   :  { %3402 = vmatprep.subr.bf16.mxu0 %v3859_v46 }
 0x30d   :  { %v576_v13 = vpop.permute.xlu0 %575  ;;  %v527_v20 = vpop.permute.xlu1 %526 }
 0x30e   :  { %3375 = vmatmul.mubr.msk.bf16.vlgmr.msra.gmra.mrb[4].mxu1 %vm282_vm2, %v244_v59  ;;  %v581_v15 = vsel %vm282_vm2, %v576_v13, 0  ;;  %v532_v21 = vsel %vm282_vm2, %v527_v20, 0 }
 0x30f   :  { %3379 = vmatpush3.bf16.xpose.msra.mxu1 %v385_v12  ;;  %3380 = vmatprep.mubr.msk.bf16.mxu1 %vm3862_vm1, %v3859_v46 }
 0x310   :  { %3384 = vmatprep.subr.bf16.mxu1 %v3859_v46 }
 0x311   :  { %v625_v23 = vpop.permute.xlu1 %624 }
 0x312   :  { %3393 = vmatmul.mubr.msk.bf16.vlgmr.msra.gmra.mrb[4].mxu0 %vm282_vm2, %v247_v63  ;;  %v630_v24 = vsel %vm282_vm2, %v625_v23, 0 }
 0x313   :  { %3403 = vmatpush3.bf16.xpose.msra.mxu0 %v581_v15  ;;  %3404 = vmatprep.mubr.msk.bf16.mxu0 %vm3862_vm1, %v3859_v46 }
 0x314   :  { %3414 = vmatprep.subr.bf16.mxu0 %v3859_v46 }
 0x316   :  { %3381 = vmatmul.mubr.msk.bf16.vlgmr.msra.gmra.mrb[8].mxu1 %vm282_vm2, %v245_v58 }
 0x317   :  { %3385 = vmatpush3.bf16.xpose.msra.mxu1 %v434_v17  ;;  %3386 = vmatprep.mubr.msk.bf16.mxu1 %vm3862_vm1, %v3859_v46 }
 0x318   :  { %3396 = vmatprep.subr.bf16.mxu1 %v3859_v46 }
 0x31a   :  { %3405 = vmatmul.mubr.msk.bf16.vlgmr.msra.gmra.mrb[8].mxu0 %vm282_vm2, %v249_v2 }
 0x31b   :  { %3415 = vmatpush3.bf16.msra.mxu0 %v774_v19  ;;  %3416 = vmatprep.mubr.msk.bf16.mxu0 %vm3862_vm1, %v3859_v46 }
 0x31c   :  { %3426 = vmatprep.subr.bf16.mxu0 %v3859_v46 }
 0x31e   :  { %3387 = vmatmul.mubr.msk.bf16.vlgmr.msra.gmra.mrb[12].mxu1 %vm282_vm2, %v246_v62  ;;  %v64_v62 = vld [vmem:[%s4721_s1 + $0x20] sm:$0xff] }
 0x31f   :  { %3397 = vmatpush3.bf16.xpose.msra.mxu1 %v532_v21  ;;  %3398 = vmatprep.mubr.msk.bf16.mxu1 %vm3862_vm1, %v3859_v46 }
 0x320   :  { %3408 = vmatprep.subr.bf16.mxu1 %v3859_v46 }
 0x326   :  { %3399 = vmatmul.mubr.msk.bf16.vlgmr.msra.gmra.mrb[16].mxu1 %vm282_vm2, %v248_v3 }
 0x327   :  { %3409 = vmatpush3.bf16.xpose.msra.mxu1 %v630_v24  ;;  %3410 = vmatprep.mubr.msk.bf16.mxu1 %vm3862_vm1, %v3859_v46 }
 0x328   :  { %3420 = vmatprep.subr.bf16.mxu1 %v3859_v46 }
 0x32e   :  { %3411 = vmatmul.mubr.msk.bf16.vlgmr.msra.gmra.mrb[20].mxu1 %vm282_vm2, %v250_v6  ;;  %v66_v6 = vld [vmem:[%s4721_s1 + $0x30] sm:$0xff] }
 0x32f   :  { %3422 = vmatprep.mubr.msk.bf16.mxu1 %vm3862_vm1, %v3859_v46 }
 0x374   :  { %v323_v26 = vpop.f32.mrb[0].mxu1 }
 0x375   :  { %v4096_v27 = vadd.f32 %v323_v26, %v60_v25  ;;  %v3370_v28 = vpop.f32.mrb[1].mxu1 }
 0x376   :  { %v326_v29 = vpop.f32.mrb[2].mxu1 }
 0x377   :  { %v3371_v30 = vpop.f32.mrb[3].mxu1  ;;  %v673_v31 = vsel %vm672_vm4, %v4096_v27, -inf }
 0x378   :  { %674 = vmax.xlane.f32.xlu0 %v673_v31 }
 0x3e1   :  { %v372_v33 = vpop.f32.mrb[4].mxu1 }
 0x3e2   :  { %v4103_v34 = vadd.f32 %v372_v33, %v61_v32  ;;  %v3376_v35 = vpop.f32.mrb[5].mxu1 }
 0x3e3   :  { %v375_v36 = vpop.f32.mrb[6].mxu1 }
 0x3e4   :  { %v3377_v39 = vpop.f32.mrb[7].mxu1  ;;  %v676_v40 = vsel %vm672_vm4, %v4103_v34, -inf }
 0x3e5   :  { %677 = vmax.xlane.f32.xlu1 %v676_v40  ;;  %v519_v43 = vpop.f32.mrb[4].mxu0 }
 0x3e6   :  { %v3394_v44 = vpop.f32.mrb[5].mxu0  ;;  %v520_v3 = vadd.f32 %v519_v43, %v64_v62 }
 0x3e7   :  { %v522_v47 = vpop.f32.mrb[6].mxu0 }
 0x3e8   :  { %v3395_v49 = vpop.f32.mrb[7].mxu0  ;;  %v685_v9 = vsel %vm672_vm4, %v520_v3, -inf }
 0x3e9   :  { %v421_v50 = vpop.f32.mrb[8].mxu1 }
 0x3ea   :  { %v4110_v51 = vadd.f32 %v421_v50, %v62_v48  ;;  %v3382_v52 = vpop.f32.mrb[9].mxu1 }
 0x3eb   :  { %v424_v54 = vpop.f32.mrb[10].mxu1 }
 0x3ec   :  { %v3383_v55 = vpop.f32.mrb[11].mxu1  ;;  %v679_v56 = vsel %vm672_vm4, %v4110_v51, -inf }
 0x3ed   :  { %680 = vmax.xlane.f32.xlu0 %v679_v56  ;;  %v617_v57 = vpop.f32.mrb[8].mxu0 }
 0x3ee   :  { %v3406_v58 = vpop.f32.mrb[9].mxu0  ;;  %v618_v8 = vadd.f32 %v617_v57, %v66_v6 }
 0x3ef   :  { %v620_v59 = vpop.f32.mrb[10].mxu0 }
 0x3f0   :  { %v3407_v61 = vpop.f32.mrb[11].mxu0  ;;  %v691_v17 = vsel %vm672_vm4, %v618_v8, -inf }
 0x3f1   :  { %v470_v63 = vpop.f32.mrb[12].mxu1 }
 0x3f2   :  { %v4120_v0 = vadd.f32 %v470_v63, %v63_v60  ;;  %v3388_v1 = vpop.f32.mrb[13].mxu1 }
 0x3f3   :  { %v473_v2 = vpop.f32.mrb[14].mxu1 }
 0x3f4   :  { %v3389_v4 = vpop.f32.mrb[15].mxu1  ;;  %v682_v5 = vsel %vm672_vm4, %v4120_v0, -inf }
 0x3f5   :  { %683 = vmax.xlane.f32.xlu0 %v682_v5 }
 0x3f9   :  { %v568_v10 = vpop.f32.mrb[16].mxu1  ;;  %686 = vmax.xlane.f32.xlu0 %v685_v9 }
 0x3fa   :  { %v4131_v11 = vadd.f32 %v568_v10, %v65_v7  ;;  %v3400_v12 = vpop.f32.mrb[17].mxu1 }
 0x3fb   :  { %v571_v13 = vpop.f32.mrb[18].mxu1 }
 0x3fc   :  { %v3401_v15 = vpop.f32.mrb[19].mxu1  ;;  %v688_v16 = vsel %vm672_vm4, %v4131_v11, -inf }
 0x3fd   :  { %689 = vmax.xlane.f32.xlu1 %v688_v16  ;;  %692 = vmax.xlane.f32.xlu0 %v691_v17 }
 0x401   :  { %v666_v19 = vpop.f32.mrb[20].mxu1 }
 0x402   :  { %v4139_v20 = vadd.f32 %v666_v19, %v67_v18  ;;  %v3412_v21 = vpop.f32.mrb[21].mxu1 }
 0x403   :  { %v669_v23 = vpop.f32.mrb[22].mxu1 }
 0x404   :  { %v3413_v24 = vpop.f32.mrb[23].mxu1  ;;  %v694_v25 = vsel %vm672_vm4, %v4139_v20, -inf }
 0x405   :  { %695 = vmax.xlane.f32.xlu1 %v694_v25  ;;  %v675_v26 = vpop.xlane.xlu0 %674 }
 0x406   :  { %v697_v28 = vsub.f32 %v4096_v27, %v675_v26 }
 0x408   :  { %v705_v29 = vmul.f32 1.442695, %v697_v28 }
 0x40a   :  { %3762 = vpow2.f32 %v705_v29 }
 0x413   :  { %252 = vrot.lane.b32.xlu0 %v4061_v14, %s3861_s27 }
 0x414   :  { %v3763_v30 = vpop.eup %3762 }
 0x415   :  { %v721_v31 = vsel %vm672_vm4, %v3763_v30, 0.0 }
 0x416   :  { %255 = vrot.lane.b32.xlu1 %v4061_v14, %s3860_s3 }
 0x432   :  { %722 = vadd.xlane.f32.xlu0 %v721_v31 }
 0x472   :  { %v678_v32 = vpop.xlane.xlu1 %677 }
 0x473   :  { %v698_v33 = vsub.f32 %v4103_v34, %v678_v32 }
 0x475   :  { %v707_v35 = vmul.f32 1.442695, %v698_v33  ;;  %v275_v33 = vpack.c.bf16 %v4028_v53, %v4028_v53 }
 0x477   :  { %3764 = vpow2.f32 %v707_v35 }
 0x47a   :  { %v681_v36 = vpop.xlane.xlu0 %680 }
 0x47b   :  { %v699_v27 = vsub.f32 %v4110_v51, %v681_v36 }
 0x47d   :  { %v709_v48 = vmul.f32 1.442695, %v699_v27 }
 0x481   :  { %v4150_v39 = vpop.eup %3764 }
 0x482   :  { %v684_v40 = vpop.xlane.xlu0 %683  ;;  %v724_v43 = vsel %vm672_vm4, %v4150_v39, 0.0 }
 0x483   :  { %725 = vadd.xlane.f32.xlu1 %v724_v43  ;;  %v700_v62 = vsub.f32 %v4120_v0, %v684_v40 }
 0x485   :  { %v711_v1 = vmul.f32 1.442695, %v700_v62 }
 0x486   :  { %v687_v44 = vpop.xlane.xlu0 %686 }
 0x487   :  { %v701_v47 = vsub.f32 %v520_v3, %v687_v44 }
 0x489   :  { %v713_v49 = vmul.f32 1.442695, %v701_v47 }
 0x48a   :  { %v693_v50 = vpop.xlane.xlu0 %692  ;;  %v690_v63 = vpop.xlane.xlu1 %689 }
 0x48b   :  { %3766 = vpow2.f32 %v713_v49  ;;  %v703_v52 = vsub.f32 %v618_v8, %v693_v50  ;;  %v702_v2 = vsub.f32 %v4131_v11, %v690_v63 }
 0x48c   :  { %3768 = vpow2.f32 %v709_v48 }
 0x48d   :  { %v717_v34 = vmul.f32 1.442695, %v703_v52  ;;  %v715_v5 = vmul.f32 1.442695, %v702_v2 }
 0x48e   :  { %v253_v54 = vpop.permute.xlu0 %252 }
 0x48f   :  { %v272_v55 = vpack.c.bf16 %v253_v54, %v253_v54  ;;  %3770 = vpow2.f32 %v717_v34 }
 0x491   :  { %v820_v56 = vsel %vm772_vm3, %v272_v55, 0 }
 0x492   :  { %3421 = vmatpush3.bf16.msra.mxu1 %v820_v56  ;;  %v696_v4 = vpop.xlane.xlu1 %695 }
 0x493   :  { %3432 = vmatprep.subr.bf16.mxu1 %v3859_v46  ;;  %v704_v6 = vsub.f32 %v4139_v20, %v696_v4 }
 0x495   :  { %v4157_v57 = vpop.eup %3766  ;;  %v719_v7 = vmul.f32 1.442695, %v704_v6 }
 0x496   :  { %v733_v51 = vsel %vm672_vm4, %v4157_v57, 0.0  ;;  %v3769_v58 = vpop.eup %3768  ;;  %v256_v8 = vpop.permute.xlu1 %255 }
 0x497   :  { %734 = vadd.xlane.f32.xlu0 %v733_v51  ;;  %v727_v60 = vsel %vm672_vm4, %v3769_v58, 0.0  ;;  %v273_v9 = vpack.c.bf16 %v256_v8, %v256_v8 }
 0x499   :  { %v4161_v59 = vpop.eup %3770  ;;  %v866_v13 = vsel %vm772_vm3, %v273_v9, 0 }
 0x49a   :  { %v739_v61 = vsel %vm672_vm4, %v4161_v59, 0.0 }
 0x49b   :  { %728 = vadd.xlane.f32.xlu0 %v727_v60  ;;  %740 = vadd.xlane.f32.xlu1 %v739_v61 }
 0x4ac   :  { %262 = vrot.lane.b32.xlu1 %v4028_v53, %s3861_s27 }
 0x4b1   :  { %258 = vrot.lane.b32.xlu0 %v4061_v14, %s3863_s28 }
 0x4b5   :  { %265 = vrot.lane.b32.xlu0 %v4028_v53, %s3860_s3 }
 0x4bf   :  { %v723_v3 = vpop.xlane.xlu0 %722 }
 0x4c0   :  { %3772 = vrcp.f32 %v723_v3 }
 0x4c1   :  { %3774 = vpow2.f32 %v711_v1 }
 0x4c2   :  { %3776 = vpow2.f32 %v715_v5 }
 0x4c3   :  { %3778 = vpow2.f32 %v719_v7 }
 0x4ca   :  { %v3773_v14 = vpop.eup %3772 }
 0x4cb   :  { %v753_v10 = vmul.f32 %v3773_v14, %v3763_v30  ;;  %v4175_v12 = vpop.eup %3774 }
 0x4cc   :  { %v730_v11 = vsel %vm672_vm4, %v4175_v12, 0.0  ;;  %v4183_v15 = vpop.eup %3776 }
 0x4cd   :  { %v761_v0 = vpack.c.bf16 %v753_v10, %v753_v10  ;;  %v736_v16 = vsel %vm672_vm4, %v4183_v15, 0.0  ;;  %v4188_v17 = vpop.eup %3778 }
 0x4ce   :  { %v742_v18 = vsel %vm672_vm4, %v4188_v17, 0.0 }
 0x4cf   :  { %3417 = vmatmul.mubr.msk.bf16.vlgmr.msra.gmra.mrb[12].mxu0 %vm672_vm4, %v761_v0 }
 0x4d0   :  { %3427 = vmatpush3.bf16.msra.mxu0 %v866_v13  ;;  %3428 = vmatprep.mubr.msk.bf16.mxu0 %vm3862_vm1, %v3859_v46 }
 0x4d1   :  { %731 = vadd.xlane.f32.xlu1 %v730_v11  ;;  %3438 = vmatprep.subr.bf16.mxu0 %v3859_v46 }
 0x4d5   :  { %737 = vadd.xlane.f32.xlu1 %v736_v16  ;;  %v3710_v16 = vld [vmem:[%s4722_s6] sm:$0xff]  }
 0x4d9   :  { %743 = vadd.xlane.f32.xlu1 %v742_v18 }
 0x4ea   :  { %268 = vrot.lane.b32.xlu1 %v4028_v53, %s3863_s28 }
 0x510   :  { %v726_v19 = vpop.xlane.xlu1 %725 }
 0x511   :  { %3780 = vrcp.f32 %v726_v19 }
 0x51b   :  { %v3781_v20 = vpop.eup %3780 }
 0x51c   :  { %v754_v21 = vmul.f32 %v3781_v20, %v4150_v39  ;;  %v958_v39 = vsel %vm772_vm3, %v275_v33, 0 }
 0x51e   :  { %v762_v23 = vpack.c.bf16 %v754_v21, %v754_v21 }
 0x520   :  { %3423 = vmatmul.mubr.msk.bf16.vlgmr.msra.gmra.mrb[24].mxu1 %vm672_vm4, %v762_v23 }
 0x521   :  { %3434 = vmatprep.mubr.msk.bf16.mxu1 %vm3862_vm1, %v3859_v46 }
 0x524   :  { %v735_v24 = vpop.xlane.xlu0 %734 }
 0x528   :  { %v729_v25 = vpop.xlane.xlu0 %728  ;;  %v741_v30 = vpop.xlane.xlu1 %740 }
 0x529   :  { %3782 = vrcp.f32 %v729_v25 }
 0x52a   :  { %3784 = vrcp.f32 %v735_v24 }
 0x52b   :  { %3786 = vrcp.f32 %v741_v30 }
 0x52c   :  { %v259_v26 = vpop.permute.xlu0 %258  ;;  %v263_v50 = vpop.permute.xlu1 %262 }
 0x52d   :  { %v274_v28 = vpack.c.bf16 %v259_v26, %v259_v26  ;;  %v276_v56 = vpack.c.bf16 %v263_v50, %v263_v50 }
 0x52f   :  { %v912_v29 = vsel %vm772_vm3, %v274_v28, 0  ;;  %v3711_v28 = vld [vmem:[%s4722_s6 + $0x8] sm:$0xff]  }
 0x530   :  { %3433 = vmatpush3.bf16.msra.mxu1 %v912_v29  ;;  %v266_v40 = vpop.permute.xlu0 %265 }
 0x531   :  { %3444 = vmatprep.subr.bf16.mxu1 %v3859_v46  ;;  %v277_v27 = vpack.c.bf16 %v266_v40, %v266_v40 }
 0x533   :  { %v3783_v31 = vpop.eup %3782  ;;  %v1050_v53 = vsel %vm772_vm3, %v277_v27, 0 }
 0x534   :  { %v755_v32 = vmul.f32 %v3783_v31, %v3769_v58  ;;  %v3785_v36 = vpop.eup %3784  ;;  %v3712_v31 = vld [vmem:[%s4722_s6 + $0x10] sm:$0xff]  }
 0x535   :  { %v757_v43 = vmul.f32 %v3785_v36, %v4157_v57  ;;  %v3787_v47 = vpop.eup %3786 }
 0x536   :  { %v763_v35 = vpack.c.bf16 %v755_v32, %v755_v32  ;;  %v759_v48 = vmul.f32 %v3787_v47, %v4161_v59  ;;  %v1004_v59 = vsel %vm772_vm3, %v276_v56, 0 }
 0x537   :  { %v765_v44 = vpack.c.bf16 %v757_v43, %v757_v43 }
 0x538   :  { %3429 = vmatmul.mubr.msk.bf16.vlgmr.msra.gmra.mrb[16].mxu0 %vm672_vm4, %v763_v35  ;;  %v767_v49 = vpack.c.bf16 %v759_v48, %v759_v48  ;;  %v3713_v35 = vld [vmem:[%s4722_s6 + $0x18] sm:$0xff]  }
 0x539   :  { %3439 = vmatpush3.bf16.msra.mxu0 %v958_v39  ;;  %3440 = vmatprep.mubr.msk.bf16.mxu0 %vm3862_vm1, %v3859_v46 }
 0x53a   :  { %3450 = vmatprep.subr.bf16.mxu0 %v3859_v46 }
 0x540   :  { %3441 = vmatmul.mubr.msk.bf16.vlgmr.msra.gmra.mrb[20].mxu0 %vm672_vm4, %v765_v44 }
 0x541   :  { %3451 = vmatpush3.bf16.msra.mxu0 %v1050_v53  ;;  %3452 = vmatprep.mubr.msk.bf16.mxu0 %vm3862_vm1, %v3859_v46 }
 0x542   :  { %3462 = vmatprep.subr.bf16.mxu0 %v3859_v46 }
 0x548   :  { %3453 = vmatmul.mubr.msk.bf16.vlgmr.msra.gmra.mrb[24].mxu0 %vm672_vm4, %v767_v49 }
 0x549   :  { %3470 = vmatprep.mubr.msk.bf16.mxu0 %vm3862_vm1, %v3859_v46  ;;  %3463 = vmatpush3.bf16.msra.mxu0 %v3710_v16 }
 0x54a   :  { %3464 = vmatprep.subr.bf16.mxu0 %v3859_v46 }
 0x54d   :  { %3465 = vmatpush3.bf16.msra.mxu0 %v3711_v28 }
 0x54e   :  { %3466 = vmatprep.subr.bf16.mxu0 %v3859_v46 }
 0x551   :  { %3467 = vmatpush3.bf16.msra.mxu0 %v3712_v31 }
 0x552   :  { %3468 = vmatprep.subr.bf16.mxu0 %v3859_v46 }
 0x555   :  { %3469 = vmatpush3.bf16.msra.mxu0 %v3713_v35 }
 0x556   :  { %3486 = vmatprep.subr.bf16.mxu0 %v3859_v46 }
 0x55e   :  { %v732_v52 = vpop.xlane.xlu1 %731 }
 0x55f   :  { %3788 = vrcp.f32 %v732_v52 }
 0x562   :  { %v738_v34 = vpop.xlane.xlu1 %737 }
 0x563   :  { %3790 = vrcp.f32 %v738_v34 }
 0x566   :  { %v744_v54 = vpop.xlane.xlu1 %743 }
 0x567   :  { %3792 = vrcp.f32 %v744_v54 }
 0x569   :  { %v3789_v55 = vpop.eup %3788 }
 0x56a   :  { %v756_v57 = vmul.f32 %v3789_v55, %v4175_v12  ;;  %v269_v60 = vpop.permute.xlu1 %268 }
 0x56b   :  { %v278_v62 = vpack.c.bf16 %v269_v60, %v269_v60 }
 0x56c   :  { %v764_v51 = vpack.c.bf16 %v756_v57, %v756_v57 }
 0x56d   :  { %v3791_v58 = vpop.eup %3790  ;;  %v1096_v2 = vsel %vm772_vm3, %v278_v62, 0 }
 0x56e   :  { %3435 = vmatmul.mubr.msk.bf16.vlgmr.msra.gmra.mrb[28].mxu1 %vm672_vm4, %v764_v51  ;;  %v758_v61 = vmul.f32 %v3791_v58, %v4183_v15 }
 0x56f   :  { %3445 = vmatpush3.bf16.msra.mxu1 %v1004_v59  ;;  %3446 = vmatprep.mubr.msk.bf16.mxu1 %vm3862_vm1, %v3859_v46 }
 0x570   :  { %3456 = vmatprep.subr.bf16.mxu1 %v3859_v46  ;;  %v766_v63 = vpack.c.bf16 %v758_v61, %v758_v61 }
 0x571   :  { %v3793_v1 = vpop.eup %3792 }
 0x572   :  { %v760_v3 = vmul.f32 %v3793_v1, %v4188_v17 }
 0x574   :  { %v768_v4 = vpack.c.bf16 %v760_v3, %v760_v3  ;;  %v3130_v3 = vld [vmem:[%s4723_s7] ss:$0 sm:$0xff] }
 0x576   :  { %3447 = vmatmul.mubr.msk.bf16.vlgmr.msra.gmra.mrb[32].mxu1 %vm672_vm4, %v766_v63 }
 0x577   :  { %3457 = vmatpush3.bf16.msra.mxu1 %v1096_v2  ;;  %3458 = vmatprep.mubr.msk.bf16.mxu1 %vm3862_vm1, %v3859_v46 }
 0x578   :  { %3474 = vmatprep.subr.bf16.mxu1 %v3859_v46 }
 0x57e   :  { %3459 = vmatmul.mubr.msk.bf16.vlgmr.msra.gmra.mrb[36].mxu1 %vm672_vm4, %v768_v4 }
 0x57f   :  { %3482 = vmatprep.mubr.msk.bf16.mxu1 %vm3862_vm1, %v3859_v46 }
 0x5a2   :  { %v810_v5 = vpop.f32.mrb[12].mxu0 }
 0x5a3   :  { %v3418_v6 = vpop.f32.mrb[13].mxu0 }
 0x5a4   :  { %v813_v7 = vpop.f32.mrb[14].mxu0 }
 0x5a5   :  { %v3419_v8 = vpop.f32.mrb[15].mxu0 }
 0x5f3   :  { %v856_v14 = vpop.f32.mrb[24].mxu1 }
 0x5f4   :  { %v3424_v9 = vpop.f32.mrb[25].mxu1 }
 0x5f5   :  { %v859_v10 = vpop.f32.mrb[26].mxu1 }
 0x5f6   :  { %v3425_v12 = vpop.f32.mrb[27].mxu1 }
 0x60b   :  { %v902_v0 = vpop.f32.mrb[16].mxu0 }
 0x60c   :  { %v3430_v13 = vpop.f32.mrb[17].mxu0 }
 0x60d   :  { %v905_v11 = vpop.f32.mrb[18].mxu0 }
 0x60e   :  { %v3431_v15 = vpop.f32.mrb[19].mxu0 }
 0x613   :  { %v994_v17 = vpop.f32.mrb[20].mxu0 }
 0x614   :  { %v3442_v18 = vpop.f32.mrb[21].mxu0 }
 0x615   :  { %v997_v19 = vpop.f32.mrb[22].mxu0 }
 0x616   :  { %v3443_v20 = vpop.f32.mrb[23].mxu0 }
 0x61b   :  { %v1086_v21 = vpop.f32.mrb[24].mxu0 }
 0x61c   :  { %v3673_v23 = vpack.i.bf16 %v1086_v21, %v902_v0  ;;  %v3454_v24 = vpop.f32.mrb[25].mxu0 }
 0x61d   :  { %v1089_v25 = vpop.f32.mrb[26].mxu0  ;;  %v3716_v24 = vld [vmem:[%s4724_s10 + $0x10] sm:$0xff]  }
 0x61e   :  { %3674 = vrot.lane.b32.xlu1 %v3673_v23, %s4737_s23  ;;  %v3455_v26 = vpop.f32.mrb[27].mxu0  ;;  %v3715_v23 = vld [vmem:[%s4724_s10 + $0x8] sm:$0xff]   ;;  %v3717_v25 = vld [vmem:[%s4724_s10 + $0x18] sm:$0xff]   ;;  %s4746_s23 = smov 32  }
 0x641   :  { %v948_v29 = vpop.f32.mrb[28].mxu1 }
 0x642   :  { %v3436_v30 = vpop.f32.mrb[29].mxu1 }
 0x643   :  { %v951_v32 = vpop.f32.mrb[30].mxu1 }
 0x644   :  { %v3437_v33 = vpop.f32.mrb[31].mxu1 }
 0x649   :  { %v1040_v36 = vpop.f32.mrb[32].mxu1 }
 0x64a   :  { %v3668_v39 = vpack.i.bf16 %v1040_v36, %v856_v14  ;;  %v3448_v40 = vpop.f32.mrb[33].mxu1  ;;  %v3136_v36 = vld [vmem:[%s4725_s8] ss:$0 sm:$0xff] }
 0x64b   :  { %v1043_v43 = vpop.f32.mrb[34].mxu1 }
 0x64c   :  { %3669 = vrot.lane.b32.xlu0 %v3668_v39, %s3866_s4  ;;  %v3449_v27 = vpop.f32.mrb[35].mxu1 }
 0x64d   :  { %v3137_v27 = vld [vmem:[%s4726_s9] ss:$0 sm:$0xff] }
 0x651   :  { %v1132_v44 = vpop.f32.mrb[36].mxu1 }
 0x652   :  { %v3678_v47 = vpack.i.bf16 %v1132_v44, %v948_v29  ;;  %v3460_v53 = vpop.f32.mrb[37].mxu1 }
 0x653   :  { %v1135_v48 = vpop.f32.mrb[38].mxu1 }
 0x654   :  { %3679 = vrot.lane.b32.xlu0 %v3678_v47, %s4738_s21  ;;  %v3461_v49 = vpop.f32.mrb[39].mxu1 }
 0x655   :  { %v3718_v49 = vld [vmem:[%s4727_s12] sm:$0xff]  }
 0x690   :  { %v3675_v54 = vpop.permute.xlu1 %3674 }
 0x691   :  { %v3677_v57 = vunpack.i.h.bf16 %v3675_v54  ;;  %v3676_v51 = vunpack.i.l.bf16 %v3675_v54  ;;  %v3723_v54 = vld [vmem:[%s4727_s12 + $0x28] sm:$0xff]  }
 0x6be   :  { %v3670_v50 = vpop.permute.xlu0 %3669 }
 0x6bf   :  { %v3672_v52 = vunpack.i.h.bf16 %v3670_v50  ;;  %v3671_v34 = vunpack.i.l.bf16 %v3670_v50  ;;  %v3719_v50 = vld [vmem:[%s4727_s12 + $0x8] sm:$0xff]  }
 0x6c1   :  { %v1167_v55 = vsel %vm282_vm2, %v994_v17, %v3672_v52  ;;  %v1150_v56 = vsel %vm282_vm2, %v810_v5, %v3671_v34  ;;  %v3720_v52 = vld [vmem:[%s4727_s12 + $0x10] sm:$0xff]   ;;  %v3722_v34 = vld [vmem:[%s4727_s12 + $0x20] sm:$0xff]  }
 0x6c2   :  { %v1152_v61 = vsel %vm1151_vm5, %v1150_v56, %v3676_v51  ;;  %v1168_v62 = vsel %vm1151_vm5, %v1167_v55, %v3677_v57  ;;  %v3724_v55 = vld [vmem:[%s4727_s12 + $0x30] sm:$0xff]   ;;  %v3725_v56 = vld [vmem:[%s4727_s12 + $0x38] sm:$0xff]   ;;  %v3138_v57 = vld [vmem:[%s4728_s11] ss:$0 sm:$0xff] }
 0x6c6   :  { %v3680_v58 = vpop.permute.xlu0 %3679 }
 0x6c7   :  { %v3682_v59 = vunpack.i.h.bf16 %v3680_v58  ;;  %v3681_v60 = vunpack.i.l.bf16 %v3680_v58 }
 0x6c9   :  { %v1154_v63 = vsel %vm1153_vm6, %v1152_v61, %v3681_v60  ;;  %v1169_v1 = vsel %vm1153_vm6, %v1168_v62, %v3682_v59 }
 0x6ca   :  { %v1178_v2 = vpack.c.bf16 %v1169_v1, %v1154_v63 }
 0x6cc   :  { %3471 = vmatmul.mubr.msk.bf16.vlgmr.msra.gmra.mrb[28].mxu0 %vm72_vm0, %v1178_v2 }
 0x6cd   :  { %3502 = vmatprep.mubr.msk.bf16.mxu0 %vm3862_vm1, %v3859_v46  ;;  %3487 = vmatpush3.bf16.msra.mxu0 %v3718_v49  ;;  %v3732_v49 = vld [vmem:[%s4743_s20 + $0x60] ss:$8 sps:$4 sm:$0xff]  }
 0x6ce   :  { %3488 = vmatprep.subr.bf16.mxu0 %v3859_v46 }
 0x6d1   :  { %3489 = vmatpush3.bf16.msra.mxu0 %v3719_v50  ;;  %v3735_v50 = vld [vmem:[%s4743_s20 + $0x70] ss:$8 sps:$4 sm:$0xff]  }
 0x6d2   :  { %3490 = vmatprep.subr.bf16.mxu0 %v3859_v46 }
 0x6d5   :  { %3491 = vmatpush3.bf16.msra.mxu0 %v3720_v52  ;;  %v3737_v52 = vld [vmem:[%s4743_s20 + $0x74] ss:$8 sps:$4 sm:$0xff]  }
 0x6d6   :  { %3492 = vmatprep.subr.bf16.mxu0 %v3859_v46 }
 0x79f   :  { %v1247_v4 = vpop.f32.mrb[28].mxu0 }
 0x7a0   :  { %v1248_v5 = vadd.f32 %v3130_v3, %v1247_v4  ;;  %v3472_v6 = vpop.f32.mrb[29].mxu0 }
 0x7a1   :  { %v1250_v7 = vpop.f32.mrb[30].mxu0 }
 0x7a2   :  { %v1251_v8 = vadd.f32 %v3130_v3, %v1250_v7  ;;  %v3473_v14 = vpop.f32.mrb[31].mxu0  ;;  %v1254_v9 = vadd.f32 %v1248_v5, %v4004_v37 }
 0x7a4   :  { %v1258_v10 = vsel %vm72_vm0, %v1254_v9, 0.0  ;;  %v1255_v12 = vadd.f32 %v1251_v8, %v4006_v38  ;;  %v3714_v38 = vld [vmem:[%s4724_s10] sm:$0xff]  }
 0x7a5   :  { %1259 = vadd.xlane.f32.xlu1 %v1258_v10  ;;  %3475 = vmatpush3.bf16.msra.mxu1 %v3714_v38 }
 0x7a6   :  { %v1261_v0 = vsel %vm72_vm0, %v1255_v12, 0.0  ;;  %3476 = vmatprep.subr.bf16.mxu1 %v3859_v46 }
 0x7a7   :  { %1262 = vadd.xlane.f32.xlu0 %v1261_v0 }
 0x7a9   :  { %3477 = vmatpush3.bf16.msra.mxu1 %v3715_v23 }
 0x7aa   :  { %3478 = vmatprep.subr.bf16.mxu1 %v3859_v46 }
 0x7ad   :  { %3479 = vmatpush3.bf16.msra.mxu1 %v3716_v24 }
 0x7ae   :  { %3480 = vmatprep.subr.bf16.mxu1 %v3859_v46 }
 0x7b1   :  { %3481 = vmatpush3.bf16.msra.mxu1 %v3717_v25 }
 0x832   :  { %v1260_v13 = vpop.xlane.xlu1 %1259 }
 0x833   :  { %v1264_v11 = vmul.f32 0.015625, %v1260_v13 }
 0x834   :  { %v1263_v15 = vpop.xlane.xlu0 %1262 }
 0x835   :  { %v1266_v16 = vsub.f32 %v1254_v9, %v1264_v11  ;;  %v1265_v17 = vmul.f32 0.015625, %v1263_v15 }
 0x837   :  { %v1267_v18 = vsub.f32 %v1255_v12, %v1265_v17  ;;  %v1268_v19 = vmul.f32 %v1266_v16, %v1266_v16 }
 0x839   :  { %v1270_v20 = vsel %vm72_vm0, %v1268_v19, 0.0  ;;  %v1269_v21 = vmul.f32 %v1267_v18, %v1267_v18 }
 0x83a   :  { %1271 = vadd.xlane.f32.xlu0 %v1270_v20 }
 0x83b   :  { %v1273_v37 = vsel %vm72_vm0, %v1269_v21, 0.0 }
 0x83e   :  { %1274 = vadd.xlane.f32.xlu0 %v1273_v37 }
 0x8c7   :  { %v1272_v26 = vpop.xlane.xlu0 %1271 }
 0x8c8   :  { %v1276_v28 = vmul.f32 0.015625, %v1272_v26 }
 0x8ca   :  { %v1278_v29 = vadd.f32 1e-12, %v1276_v28 }
 0x8cb   :  { %v1275_v30 = vpop.xlane.xlu0 %1274 }
 0x8cc   :  { %3794 = vrsqrt.f32 %v1278_v29  ;;  %v1277_v31 = vmul.f32 0.015625, %v1275_v30 }
 0x8ce   :  { %v1279_v32 = vadd.f32 1e-12, %v1277_v31 }
 0x8d0   :  { %3796 = vrsqrt.f32 %v1279_v32 }
 0x8d6   :  { %v3795_v33 = vpop.eup %3794 }
 0x8d7   :  { %v1282_v35 = vmul.f32 %v3795_v33, %v1266_v16 }
 0x8d9   :  { %v1290_v40 = vmul.f32 %v3136_v36, %v1282_v35 }
 0x8da   :  { %v3797_v39 = vpop.eup %3796 }
 0x8db   :  { %v1283_v43 = vmul.f32 %v3797_v39, %v1267_v18  ;;  %v4291_v47 = vadd.f32 %v3137_v27, %v1290_v40  ;;  %v3144_v18 = vld [vmem:[%s4729_s13] ss:$0 sm:$0xff] }
 0x8dd   :  { %v1291_v44 = vmul.f32 %v3136_v36, %v1283_v43 }
 0x8df   :  { %v4293_v53 = vadd.f32 %v3137_v27, %v1291_v44  ;;  %v3728_v27 = vld [vmem:[%s4743_s20 + $0x44] ss:$8 sps:$4 sm:$0xff]   ;;  %v3726_v44 = vld [vmem:[%s4743_s20 + $0x40] ss:$8 sps:$4 sm:$0xff]  }
 0x8e0   :  { %1627 = vmatprep.subr.bf16.mxu1 %v3728_v27 }
 0x8e1   :  { %v1308_v48 = vpack.c.bf16 %v4293_v53, %v4291_v47 }
 0x8e3   :  { %3483 = vmatmul.mubr.msk.bf16.vlgmr.msra.gmra.mrb[40].mxu1 %vm72_vm0, %v1308_v48  ;;  %v3734_v48 = vld [vmem:[%s4743_s20 + $0x64] ss:$8 sps:$4 sm:$0xff]  }
 0x8e4   :  { %1659 = vmatprep.mubr.bf16.mxu1 %v3858_v22  ;;  %v3721_v22 = vld [vmem:[%s4727_s12 + $0x18] sm:$0xff]   ;;  %1628 = vmatpush1.bf16.msra.mxu1 %v3726_v44 }
 0x8e5   :  { %3493 = vmatpush3.bf16.msra.mxu0 %v3721_v22 }
 0x8e6   :  { %3494 = vmatprep.subr.bf16.mxu0 %v3859_v46 }
 0x8e9   :  { %3495 = vmatpush3.bf16.msra.mxu0 %v3722_v34 }
 0x8ea   :  { %3496 = vmatprep.subr.bf16.mxu0 %v3859_v46 }
 0x8ed   :  { %3497 = vmatpush3.bf16.msra.mxu0 %v3723_v54 }
 0x8ee   :  { %3498 = vmatprep.subr.bf16.mxu0 %v3859_v46 }
 0x8f1   :  { %3499 = vmatpush3.bf16.msra.mxu0 %v3724_v55 }
 0x8f2   :  { %3500 = vmatprep.subr.bf16.mxu0 %v3859_v46 }
 0x8f5   :  { %3501 = vmatpush3.bf16.msra.mxu0 %v3725_v56 }
 0x8f6   :  { %3518 = vmatprep.subr.bf16.mxu0 %v3859_v46 }
 0x9b6   :  { %v1377_v51 = vpop.f32.mrb[40].mxu1 }
 0x9b7   :  { %v1378_v58 = vadd.f32 %v3138_v57, %v1377_v51  ;;  %v3484_v59 = vpop.f32.mrb[41].mxu1 }
 0x9b8   :  { %v1380_v60 = vpop.f32.mrb[42].mxu1 }
 0x9b9   :  { %v1386_v61 = vmul.f32 0.044715, %v1378_v58  ;;  %v1381_v62 = vadd.f32 %v3138_v57, %v1380_v60  ;;  %v3485_v63 = vpop.f32.mrb[43].mxu1  ;;  %v1384_v0 = vmul.f32 0.5, %v1378_v58 }
 0x9ba   :  { %v3154_v63 = vld [vmem:[%s4731_s15] ss:$0 sm:$0xff] }
 0x9bb   :  { %v1388_v1 = vmul.f32 %v1386_v61, %v1378_v58  ;;  %v1387_v2 = vmul.f32 0.044715, %v1381_v62  ;;  %v1385_v13 = vmul.f32 0.5, %v1381_v62 }
 0x9bd   :  { %v1390_v3 = vmul.f32 %v1388_v1, %v1378_v58  ;;  %v1389_v4 = vmul.f32 %v1387_v2, %v1381_v62 }
 0x9bf   :  { %v1392_v5 = vadd.f32 %v1390_v3, %v1378_v58  ;;  %v1391_v6 = vmul.f32 %v1389_v4, %v1381_v62  ;;  %v3153_v58 = vld [vmem:[%s4730_s14] ss:$0 sm:$0xff] }
 0x9c1   :  { %v1394_v7 = vmul.f32 0.7978846, %v1392_v5  ;;  %v1393_v8 = vadd.f32 %v1391_v6, %v1381_v62  ;;  %v3163_v5 = vld [vmem:[%s4720_s5 + $0x2] sm:$0x3] }
 0x9c2   :  { %v1577_v6 = vrot.slane %v3163_v5, %v129_v42 }
 0x9c3   :  { %3798 = vtanh.f32 %v1394_v7  ;;  %v1395_v14 = vmul.f32 0.7978846, %v1393_v8 }
 0x9c5   :  { %3800 = vtanh.f32 %v1395_v14 }
 0x9cd   :  { %v3799_v9 = vpop.eup %3798 }
 0x9ce   :  { %v1398_v10 = vadd.f32 1.0, %v3799_v9  ;;  %v1581_v9 = vrot.slane %v3163_v5, %v133_v45 }
 0x9cf   :  { %v3801_v12 = vpop.eup %3800 }
 0x9d0   :  { %v1399_v11 = vadd.f32 1.0, %v3801_v12  ;;  %v1400_v15 = vmul.f32 %v1398_v10, %v1384_v0 }
 0x9d2   :  { %v1401_v16 = vmul.f32 %v1399_v11, %v1385_v13 }
 0x9d4   :  { %v1418_v17 = vpack.c.bf16 %v1401_v16, %v1400_v15 }
 0x9d6   :  { %3503 = vmatmul.mubr.bf16.vlgmr.msra.gmra.mrb[32].mxu0 %v1418_v17 }
 0x9d7   :  { %3520 = vmatprep.mubr.msk.bf16.mxu0 %vm3862_vm1, %v3859_v46 }
 0xaa9   :  { %v1508_v19 = vpop.f32.mrb[32].mxu0 }
 0xaaa   :  { %v1509_v20 = vadd.f32 %v3144_v18, %v1508_v19  ;;  %v3504_v21 = vpop.f32.mrb[33].mxu0 }
 0xaab   :  { %v1511_v37 = vpop.f32.mrb[34].mxu0 }
 0xaac   :  { %v1512_v38 = vadd.f32 %v3144_v18, %v1511_v37  ;;  %v3505_v23 = vpop.f32.mrb[35].mxu0  ;;  %v1515_v24 = vadd.f32 %v1509_v20, %v4291_v47  ;;  %v3731_v47 = vld [vmem:[%s4743_s20 + $0x54] ss:$8 sps:$4 sm:$0xff]  }
 0xaad   :  { %1629 = vmatprep.subr.bf16.mxu1 %v3731_v47 }
 0xaae   :  { %v1519_v25 = vsel %vm72_vm0, %v1515_v24, 0.0  ;;  %v1516_v26 = vadd.f32 %v1512_v38, %v4293_v53  ;;  %v3729_v53 = vld [vmem:[%s4743_s20 + $0x50] ss:$8 sps:$4 sm:$0xff]  }
 0xaaf   :  { %1520 = vadd.xlane.f32.xlu1 %v1519_v25  ;;  %1630 = vmatpush1.bf16.msra.mxu1 %v3729_v53 }
 0xab0   :  { %v1522_v28 = vsel %vm72_vm0, %v1516_v26, 0.0  ;;  %1631 = vmatprep.subr.bf16.mxu1 %v3734_v48 }
 0xab1   :  { %1523 = vadd.xlane.f32.xlu0 %v1522_v28 }
 0xab3   :  { %1632 = vmatpush1.bf16.msra.mxu1 %v3732_v49 }
 0xab4   :  { %1633 = vmatprep.subr.bf16.mxu1 %v3737_v52 }
 0xab7   :  { %1634 = vmatpush1.bf16.msra.mxu1 %v3735_v50  ;;  %v3850_v50 = vld [vmem:[%s4721_s1] sm:$0xff] }
 0xab8   :  { %3506 = vmatprep.subr.bf16.mxu1 %v3859_v46 }
 0xb3c   :  { %v1521_v29 = vpop.xlane.xlu1 %1520 }
 0xb3d   :  { %v1525_v30 = vmul.f32 0.015625, %v1521_v29 }
 0xb3e   :  { %v1524_v31 = vpop.xlane.xlu0 %1523 }
 0xb3f   :  { %v1527_v32 = vsub.f32 %v1515_v24, %v1525_v30  ;;  %v1526_v33 = vmul.f32 0.015625, %v1524_v31 }
 0xb41   :  { %v1528_v35 = vsub.f32 %v1516_v26, %v1526_v33  ;;  %v1529_v36 = vmul.f32 %v1527_v32, %v1527_v32 }
 0xb43   :  { %v1531_v39 = vsel %vm72_vm0, %v1529_v36, 0.0  ;;  %v1530_v40 = vmul.f32 %v1528_v35, %v1528_v35 }
 0xb44   :  { %1532 = vadd.xlane.f32.xlu1 %v1531_v39 }
 0xb45   :  { %v1534_v43 = vsel %vm72_vm0, %v1530_v40, 0.0 }
 0xb46   :  { %1535 = vadd.xlane.f32.xlu0 %v1534_v43 }
 0xbd1   :  { %v1533_v22 = vpop.xlane.xlu1 %1532 }
 0xbd2   :  { %v1537_v34 = vmul.f32 0.015625, %v1533_v22 }
 0xbd3   :  { %v1536_v54 = vpop.xlane.xlu0 %1535 }
 0xbd4   :  { %v1539_v55 = vadd.f32 1e-12, %v1537_v34  ;;  %v1538_v56 = vmul.f32 0.015625, %v1536_v54 }
 0xbd6   :  { %3802 = vrsqrt.f32 %v1539_v55  ;;  %v1540_v57 = vadd.f32 1e-12, %v1538_v56 }
 0xbd8   :  { %3804 = vrsqrt.f32 %v1540_v57 }
 0xbe0   :  { %v3803_v51 = vpop.eup %3802 }
 0xbe1   :  { %v1543_v59 = vmul.f32 %v3803_v51, %v1527_v32  ;;  %v3851_v51 = vld [vmem:[%s4721_s1 + $0x8] sm:$0xff] }
 0xbe2   :  { %v3805_v60 = vpop.eup %3804 }
 0xbe3   :  { %v1551_v61 = vmul.f32 %v3153_v58, %v1543_v59  ;;  %v1544_v62 = vmul.f32 %v3805_v60, %v1528_v35 }
 0xbe5   :  { %v1552_v1 = vmul.f32 %v3153_v58, %v1544_v62  ;;  %v4376_v2 = vadd.f32 %v3154_v63, %v1551_v61 }
 0xbe7   :  { %v4378_v3 = vadd.f32 %v3154_v63, %v1552_v1  ;;  %v3852_v63 = vld [vmem:[%s4721_s1 + $0x10] sm:$0xff] }
 0xbe9   :  { %v1570_v4 = vpack.c.bf16 %v4378_v3, %v4376_v2 }
 0xbeb   :  { %3172 = vmatmul.mubr.msk.bf16.vlgmr.msra.gmra.mrb[44].mxu1 %vm72_vm0, %v1570_v4 }
 0xbec   :  { %3508 = vmatprep.mubr.msk.bf16.mxu1 %vm3862_vm1, %v3859_v46 }
 0xcbe   :  { %v1661_v7 = vpop.f32.mrb[44].mxu1 }
 0xcbf   :  { %v1662_v8 = vadd.f32 %v1661_v7, %v1577_v6  ;;  %v1663_v14 = vpop.f32.mrb[45].mxu1 }
 0xcc0   :  { %v1665_v10 = vpop.f32.mrb[46].mxu1  ;;  %v4427_v40 = vadd.f32 %v1663_v14, %v1581_v9 }
 0xcc1   :  { %v1667_v12 = vpop.f32.mrb[47].mxu1  ;;  %1674 = vrot.lane.b32.xlu0 %v1662_v8, %s3860_s3  ;;  %1671 = vrot.lane.b32.xlu1 %v1662_v8, %s3861_s27  ;;  %v1666_v13 = vadd.f32 %v1665_v10, %v1577_v6  ;;  %v1690_v42 = vpack.c.bf16 %v1662_v8, %v1662_v8 }
 0xcc2   :  { %v4394_v0 = vadd.f32 %v1667_v12, %v1581_v9  ;;  %v1718_v44 = vpack.c.bf16 %v4427_v40, %v4427_v40  ;;  %v3853_v9 = vld [vmem:[%s4721_s1 + $0x18] sm:$0xff]  ;;  %v3854_v12 = vld [vmem:[%s4721_s1 + $0x20] sm:$0xff] }
 0xcc3   :  { %v1694_v18 = vpack.c.bf16 %v1666_v13, %v1666_v13 }
 0xcc4   :  { %v2218_v48 = vsel %vm772_vm3, %v1718_v44, 0 }
 0xcc5   :  { %1687 = vrot.lane.b32.xlu0 %v1666_v13, %s3863_s28  ;;  %1677 = vrot.lane.b32.xlu1 %v1662_v8, %s3863_s28 }
 0xcc9   :  { %1681 = vrot.lane.b32.xlu1 %v1666_v13, %s3861_s27 }
 0xccd   :  { %1684 = vrot.lane.b32.xlu1 %v1666_v13, %s3860_s3 }
 0xcd1   :  { %1727 = vrot.lane.b32.xlu1 %v1690_v42, %s3864_s29 }
 0xd33   :  { %v1675_v41 = vpop.permute.xlu0 %1674  ;;  %v1672_v45 = vpop.permute.xlu1 %1671 }
 0xd34   :  { %v1692_v11 = vpack.c.bf16 %v1675_v41, %v1675_v41  ;;  %v1691_v15 = vpack.c.bf16 %v1672_v45, %v1672_v45 }
 0xd36   :  { %1776 = vrot.lane.b32.xlu0 %v1691_v15, %s3864_s29  ;;  %1825 = vrot.lane.b32.xlu1 %v1692_v11, %s3864_s29 }
 0xd37   :  { %v1678_v16 = vpop.permute.xlu1 %1677  ;;  %v1688_v21 = vpop.permute.xlu0 %1687 }
 0xd38   :  { %v1693_v17 = vpack.c.bf16 %v1678_v16, %v1678_v16  ;;  %v1697_v38 = vpack.c.bf16 %v1688_v21, %v1688_v21  ;;  %v3855_v21 = vld [vmem:[%s4721_s1 + $0x28] sm:$0xff] }
 0xd3a   :  { %1874 = vrot.lane.b32.xlu0 %v1693_v17, %s3864_s29  ;;  %1923 = vrot.lane.b32.xlu1 %v1694_v18, %s3864_s29 }
 0xd3b   :  { %v1682_v19 = vpop.permute.xlu1 %1681 }
 0xd3c   :  { %v1695_v20 = vpack.c.bf16 %v1682_v19, %v1682_v19 }
 0xd3e   :  { %1972 = vrot.lane.b32.xlu0 %v1695_v20, %s3864_s29 }
 0xd3f   :  { %v1685_v37 = vpop.permute.xlu1 %1684 }
 0xd40   :  { %v1696_v23 = vpack.c.bf16 %v1685_v37, %v1685_v37 }
 0xd42   :  { %2070 = vrot.lane.b32.xlu0 %v1697_v38, %s3864_s29  ;;  %2021 = vrot.lane.b32.xlu1 %v1696_v23, %s3864_s29 }
 0xd43   :  { %v1728_v24 = vpop.permute.xlu1 %1727 }
 0xd44   :  { %v1733_v25 = vsel %vm282_vm2, %v1728_v24, 0 }
 0xd45   :  { %3507 = vmatpush3.bf16.xpose.msra.mxu1 %v1733_v25 }
 0xd46   :  { %3512 = vmatprep.subr.bf16.mxu1 %v3859_v46 }
 0xd4c   :  { %3509 = vmatmul.mubr.msk.bf16.vlgmr.msra.gmra.mrb[48].mxu1 %vm282_vm2, %v1690_v42 }
 0xd4d   :  { %3514 = vmatprep.mubr.msk.bf16.mxu1 %vm3862_vm1, %v3859_v46 }
 0xda8   :  { %v1777_v26 = vpop.permute.xlu0 %1776  ;;  %v1826_v28 = vpop.permute.xlu1 %1825 }
 0xda9   :  { %v1782_v29 = vsel %vm282_vm2, %v1777_v26, 0  ;;  %v1831_v30 = vsel %vm282_vm2, %v1826_v28, 0 }
 0xdaa   :  { %3513 = vmatpush3.bf16.xpose.msra.mxu1 %v1782_v29  ;;  %3519 = vmatpush3.bf16.xpose.msra.mxu0 %v1831_v30 }
 0xdab   :  { %3524 = vmatprep.subr.bf16.mxu1 %v3859_v46  ;;  %3530 = vmatprep.subr.bf16.mxu0 %v3859_v46 }
 0xdac   :  { %v1875_v31 = vpop.permute.xlu0 %1874  ;;  %v1924_v32 = vpop.permute.xlu1 %1923 }
 0xdad   :  { %v1880_v33 = vsel %vm282_vm2, %v1875_v31, 0  ;;  %v1929_v35 = vsel %vm282_vm2, %v1924_v32, 0 }
 0xdb0   :  { %v1973_v36 = vpop.permute.xlu0 %1972 }
 0xdb1   :  { %3515 = vmatmul.mubr.msk.bf16.vlgmr.msra.gmra.mrb[52].mxu1 %vm282_vm2, %v1691_v15  ;;  %3521 = vmatmul.mubr.msk.bf16.vlgmr.msra.gmra.mrb[36].mxu0 %vm282_vm2, %v1692_v11  ;;  %v1978_v43 = vsel %vm282_vm2, %v1973_v36, 0 }
 0xdb2   :  { %3525 = vmatpush3.bf16.xpose.msra.mxu1 %v1880_v33  ;;  %3531 = vmatpush3.bf16.xpose.msra.mxu0 %v1929_v35  ;;  %v3857_v35 = vld [vmem:[%s4721_s1 + $0x38] sm:$0xff] }
 0xdb3   :  { %3526 = vmatprep.mubr.msk.bf16.mxu1 %vm3862_vm1, %v3859_v46  ;;  %3532 = vmatprep.mubr.msk.bf16.mxu0 %vm3862_vm1, %v3859_v46 }
 0xdb4   :  { %3536 = vmatprep.subr.bf16.mxu1 %v3859_v46  ;;  %3542 = vmatprep.subr.bf16.mxu0 %v3859_v46  ;;  %v2022_v39 = vpop.permute.xlu1 %2021  ;;  %v2071_v47 = vpop.permute.xlu0 %2070 }
 0xdb5   :  { %v2027_v27 = vsel %vm282_vm2, %v2022_v39, 0  ;;  %v2076_v53 = vsel %vm282_vm2, %v2071_v47, 0 }
 0xdb9   :  { %3527 = vmatmul.mubr.msk.bf16.vlgmr.msra.gmra.mrb[56].mxu1 %vm282_vm2, %v1693_v17  ;;  %3533 = vmatmul.mubr.msk.bf16.vlgmr.msra.gmra.mrb[40].mxu0 %vm282_vm2, %v1694_v18 }
 0xdba   :  { %3537 = vmatpush3.bf16.xpose.msra.mxu1 %v1978_v43  ;;  %3543 = vmatpush3.bf16.xpose.msra.mxu0 %v2027_v27 }
 0xdbb   :  { %3538 = vmatprep.mubr.msk.bf16.mxu1 %vm3862_vm1, %v3859_v46  ;;  %3544 = vmatprep.mubr.msk.bf16.mxu0 %vm3862_vm1, %v3859_v46 }
 0xdbc   :  { %3548 = vmatprep.subr.bf16.mxu1 %v3859_v46  ;;  %3554 = vmatprep.subr.bf16.mxu0 %v3859_v46 }
 0xdc1   :  { %3539 = vmatmul.mubr.msk.bf16.vlgmr.msra.gmra.mrb[60].mxu1 %vm282_vm2, %v1695_v20  ;;  %3545 = vmatmul.mubr.msk.bf16.vlgmr.msra.gmra.mrb[44].mxu0 %vm282_vm2, %v1696_v23 }
 0xdc2   :  { %3549 = vmatpush3.bf16.xpose.msra.mxu1 %v2076_v53  ;;  %3555 = vmatpush3.bf16.msra.mxu0 %v2218_v48 }
 0xdc3   :  { %3550 = vmatprep.mubr.msk.bf16.mxu1 %vm3862_vm1, %v3859_v46  ;;  %3560 = vmatprep.subr.bf16.mxu1 %v3859_v46 }
 0xdc4   :  { %3556 = vmatprep.mubr.msk.bf16.mxu0 %vm3862_vm1, %v3859_v46  ;;  %3566 = vmatprep.subr.bf16.mxu0 %v3859_v46 }
 0xdc9   :  { %3551 = vmatmul.mubr.msk.bf16.vlgmr.msra.gmra.mrb[64].mxu1 %vm282_vm2, %v1697_v38  ;;  %v3856_v38 = vld [vmem:[%s4721_s1 + $0x30] sm:$0xff] }
 0xdca   :  { %3562 = vmatprep.mubr.msk.bf16.mxu1 %vm3862_vm1, %v3859_v46 }
 0xe1f   :  { %v1769_v49 = vpop.f32.mrb[48].mxu1 }
 0xe20   :  { %v4457_v52 = vadd.f32 %v3850_v50, %v1769_v49  ;;  %v3510_v22 = vpop.f32.mrb[49].mxu1 }
 0xe21   :  { %v1772_v34 = vpop.f32.mrb[50].mxu1 }
 0xe22   :  { %v3511_v54 = vpop.f32.mrb[51].mxu1  ;;  %v2118_v55 = vsel %vm672_vm4, %v4457_v52, -inf }
 0xe23   :  { %2119 = vmax.xlane.f32.xlu1 %v2118_v55 }
 0xe84   :  { %v1818_v56 = vpop.f32.mrb[52].mxu1  ;;  %v1867_v57 = vpop.f32.mrb[36].mxu0 }
 0xe85   :  { %v4464_v58 = vadd.f32 %v3851_v51, %v1818_v56  ;;  %v3516_v59 = vpop.f32.mrb[53].mxu1  ;;  %v3522_v60 = vpop.f32.mrb[37].mxu0  ;;  %v1868_v1 = vadd.f32 %v3852_v63, %v1867_v57 }
 0xe86   :  { %v1821_v61 = vpop.f32.mrb[54].mxu1  ;;  %v1870_v62 = vpop.f32.mrb[38].mxu0 }
 0xe87   :  { %v3517_v4 = vpop.f32.mrb[55].mxu1  ;;  %v3523_v5 = vpop.f32.mrb[39].mxu0  ;;  %v2121_v6 = vsel %vm672_vm4, %v4464_v58, -inf  ;;  %v2124_v7 = vsel %vm672_vm4, %v1868_v1, -inf }
 0xe88   :  { %2122 = vmax.xlane.f32.xlu0 %v2121_v6 }
 0xe8c   :  { %v1916_v8 = vpop.f32.mrb[56].mxu1  ;;  %2125 = vmax.xlane.f32.xlu0 %v2124_v7  ;;  %v1965_v14 = vpop.f32.mrb[40].mxu0 }
 0xe8d   :  { %v1917_v10 = vadd.f32 %v3853_v9, %v1916_v8  ;;  %v1966_v13 = vadd.f32 %v3854_v12, %v1965_v14  ;;  %v3528_v42 = vpop.f32.mrb[57].mxu1  ;;  %v3534_v41 = vpop.f32.mrb[41].mxu0 }
 0xe8e   :  { %v1919_v45 = vpop.f32.mrb[58].mxu1  ;;  %v1968_v11 = vpop.f32.mrb[42].mxu0 }
 0xe8f   :  { %v3529_v15 = vpop.f32.mrb[59].mxu1  ;;  %v3535_v16 = vpop.f32.mrb[43].mxu0  ;;  %v2127_v17 = vsel %vm672_vm4, %v1917_v10, -inf  ;;  %v2130_v18 = vsel %vm672_vm4, %v1966_v13, -inf }
 0xe90   :  { %2128 = vmax.xlane.f32.xlu0 %v2127_v17  ;;  %2131 = vmax.xlane.f32.xlu1 %v2130_v18 }
 0xe94   :  { %v2014_v19 = vpop.f32.mrb[60].mxu1  ;;  %v2063_v20 = vpop.f32.mrb[44].mxu0 }
 0xe95   :  { %v2015_v37 = vadd.f32 %v3855_v21, %v2014_v19  ;;  %v2064_v23 = vadd.f32 %v3856_v38, %v2063_v20  ;;  %v3540_v24 = vpop.f32.mrb[61].mxu1  ;;  %v3546_v25 = vpop.f32.mrb[45].mxu0 }
 0xe96   :  { %v2017_v26 = vpop.f32.mrb[62].mxu1  ;;  %v2066_v28 = vpop.f32.mrb[46].mxu0 }
 0xe97   :  { %v3541_v29 = vpop.f32.mrb[63].mxu1  ;;  %v3547_v30 = vpop.f32.mrb[47].mxu0  ;;  %v2133_v31 = vsel %vm672_vm4, %v2015_v37, -inf  ;;  %v2136_v32 = vsel %vm672_vm4, %v2064_v23, -inf }
 0xe98   :  { %2134 = vmax.xlane.f32.xlu0 %v2133_v31  ;;  %2137 = vmax.xlane.f32.xlu1 %v2136_v32 }
 0xe9c   :  { %v2112_v33 = vpop.f32.mrb[64].mxu1 }
 0xe9d   :  { %v2113_v36 = vadd.f32 %v3857_v35, %v2112_v33  ;;  %v3552_v39 = vpop.f32.mrb[65].mxu1 }
 0xe9e   :  { %v2115_v43 = vpop.f32.mrb[66].mxu1 }
 0xe9f   :  { %v3553_v27 = vpop.f32.mrb[67].mxu1  ;;  %v2139_v44 = vsel %vm672_vm4, %v2113_v36, -inf }
 0xea0   :  { %2140 = vmax.xlane.f32.xlu0 %v2139_v44 }
 0xea9   :  { %1699 = vrot.lane.b32.xlu1 %v4427_v40, %s3861_s27 }
 0xeb0   :  { %v2120_v47 = vpop.xlane.xlu1 %2119 }
 0xeb1   :  { %v2142_v53 = vsub.f32 %v4457_v52, %v2120_v47 }
 0xeb3   :  { %v2150_v48 = vmul.f32 1.442695, %v2142_v53 }
 0xeb5   :  { %3806 = vpow2.f32 %v2150_v48 }
 0xebf   :  { %v4495_v49 = vpop.eup %3806 }
 0xec0   :  { %v2166_v50 = vsel %vm672_vm4, %v4495_v49, 0.0 }
 0xecd   :  { %2167 = vadd.xlane.f32.xlu1 %v2166_v50 }
 0xf15   :  { %v2123_v22 = vpop.xlane.xlu0 %2122 }
 0xf16   :  { %v2143_v34 = vsub.f32 %v4464_v58, %v2123_v22 }
 0xf18   :  { %v2152_v54 = vmul.f32 1.442695, %v2143_v34 }
 0xf19   :  { %v2126_v55 = vpop.xlane.xlu0 %2125 }
 0xf1a   :  { %3808 = vpow2.f32 %v2152_v54  ;;  %v2144_v56 = vsub.f32 %v1868_v1, %v2126_v55 }
 0xf1c   :  { %v2154_v57 = vmul.f32 1.442695, %v2144_v56 }
 0xf1d   :  { %v2129_v51 = vpop.xlane.xlu0 %2128  ;;  %v2132_v59 = vpop.xlane.xlu1 %2131 }
 0xf1e   :  { %3810 = vpow2.f32 %v2154_v57  ;;  %v2145_v52 = vsub.f32 %v1917_v10, %v2129_v51  ;;  %v2146_v60 = vsub.f32 %v1966_v13, %v2132_v59 }
 0xf20   :  { %v2156_v61 = vmul.f32 1.442695, %v2145_v52  ;;  %v2158_v62 = vmul.f32 1.442695, %v2146_v60 }
 0xf22   :  { %3812 = vpow2.f32 %v2156_v61 }
 0xf23   :  { %3814 = vpow2.f32 %v2158_v62 }
 0xf24   :  { %v3809_v63 = vpop.eup %3808 }
 0xf25   :  { %v2135_v4 = vpop.xlane.xlu0 %2134  ;;  %v2138_v5 = vpop.xlane.xlu1 %2137  ;;  %v2169_v6 = vsel %vm672_vm4, %v3809_v63, 0.0 }
 0xf26   :  { %v2147_v58 = vsub.f32 %v2015_v37, %v2135_v4  ;;  %v2148_v7 = vsub.f32 %v2064_v23, %v2138_v5  ;;  %2170 = vadd.xlane.f32.xlu0 %v2169_v6 }
 0xf28   :  { %v4501_v8 = vpop.eup %3810  ;;  %v2160_v1 = vmul.f32 1.442695, %v2147_v58  ;;  %v2162_v14 = vmul.f32 1.442695, %v2148_v7 }
 0xf29   :  { %v1700_v9 = vpop.permute.xlu1 %1699  ;;  %v2172_v10 = vsel %vm672_vm4, %v4501_v8, 0.0 }
 0xf2a   :  { %3816 = vpow2.f32 %v2160_v1  ;;  %v1719_v12 = vpack.c.bf16 %v1700_v9, %v1700_v9  ;;  %2173 = vadd.xlane.f32.xlu1 %v2172_v10 }
 0xf2b   :  { %3818 = vpow2.f32 %v2162_v14 }
 0xf2c   :  { %v3813_v13 = vpop.eup %3812  ;;  %v2264_v42 = vsel %vm772_vm3, %v1719_v12, 0 }
 0xf2d   :  { %v4506_v41 = vpop.eup %3814  ;;  %v2141_v45 = vpop.xlane.xlu0 %2140  ;;  %3561 = vmatpush3.bf16.msra.mxu1 %v2264_v42  ;;  %v2175_v11 = vsel %vm672_vm4, %v3813_v13, 0.0 }
 0xf2e   :  { %v2149_v15 = vsub.f32 %v2113_v36, %v2141_v45  ;;  %2176 = vadd.xlane.f32.xlu0 %v2175_v11  ;;  %v2178_v16 = vsel %vm672_vm4, %v4506_v41, 0.0  ;;  %3572 = vmatprep.subr.bf16.mxu1 %v3859_v46 }
 0xf2f   :  { %2179 = vadd.xlane.f32.xlu1 %v2178_v16 }
 0xf30   :  { %v2164_v17 = vmul.f32 1.442695, %v2149_v15 }
 0xf32   :  { %3820 = vpow2.f32 %v2164_v17 }
 0xf34   :  { %v3817_v18 = vpop.eup %3816 }
 0xf35   :  { %v2181_v19 = vsel %vm672_vm4, %v3817_v18, 0.0  ;;  %v4513_v20 = vpop.eup %3818 }
 0xf36   :  { %2182 = vadd.xlane.f32.xlu0 %v2181_v19  ;;  %v2184_v21 = vsel %vm672_vm4, %v4513_v20, 0.0 }
 0xf3a   :  { %2185 = vadd.xlane.f32.xlu0 %v2184_v21 }
 0xf3c   :  { %v4517_v37 = vpop.eup %3820 }
 0xf3d   :  { %v2187_v38 = vsel %vm672_vm4, %v4517_v37, 0.0 }
 0xf3e   :  { %2188 = vadd.xlane.f32.xlu0 %v2187_v38 }
 0xf40   :  { %1705 = vrot.lane.b32.xlu1 %v4427_v40, %s3863_s28 }
 0xf44   :  { %1709 = vrot.lane.b32.xlu1 %v4394_v0, %s3861_s27 }
 0xf48   :  { %1712 = vrot.lane.b32.xlu1 %v4394_v0, %s3860_s3 }
 0xf4c   :  { %1715 = vrot.lane.b32.xlu1 %v4394_v0, %s3863_s28 }
 0xf54   :  { %1702 = vrot.lane.b32.xlu0 %v4427_v40, %s3860_s3 }
 0xf5a   :  { %v2168_v23 = vpop.xlane.xlu1 %2167 }
 0xf5b   :  { %3822 = vrcp.f32 %v2168_v23  ;;  %v3738_v23 = vld [vmem:[%s4722_s6 + $0x20] sm:$0xff]  }
 0xf65   :  { %v3823_v24 = vpop.eup %3822 }
 0xf66   :  { %v2198_v25 = vmul.f32 %v3823_v24, %v4495_v49 }
 0xf68   :  { %v2206_v26 = vpack.c.bf16 %v2198_v25, %v2198_v25  ;;  %v3739_v25 = vld [vmem:[%s4722_s6 + $0x28] sm:$0xff]  }
 0xf6a   :  { %3557 = vmatmul.mubr.msk.bf16.vlgmr.msra.gmra.mrb[48].mxu0 %vm672_vm4, %v2206_v26 }
 0xf6b   :  { %3568 = vmatprep.mubr.msk.bf16.mxu0 %vm3862_vm1, %v3859_v46 }
 0xfb3   :  { %v2171_v28 = vpop.xlane.xlu0 %2170 }
 0xfb4   :  { %3824 = vrcp.f32 %v2171_v28 }
 0xfb7   :  { %v2174_v29 = vpop.xlane.xlu1 %2173 }
 0xfbb   :  { %v2177_v30 = vpop.xlane.xlu0 %2176 }
 0xfbc   :  { %3826 = vrcp.f32 %v2177_v30  ;;  %v2180_v31 = vpop.xlane.xlu1 %2179 }
 0xfbd   :  { %3828 = vrcp.f32 %v2174_v29 }
 0xfbe   :  { %v3825_v32 = vpop.eup %3824 }
 0xfbf   :  { %v2199_v33 = vmul.f32 %v3825_v32, %v3809_v63  ;;  %v1722_v63 = vpack.c.bf16 %v4394_v0, %v4394_v0 }
 0xfc0   :  { %v1706_v40 = vpop.permute.xlu1 %1705 }
 0xfc1   :  { %v1721_v35 = vpack.c.bf16 %v1706_v40, %v1706_v40  ;;  %v2207_v36 = vpack.c.bf16 %v2199_v33, %v2199_v33  ;;  %v2402_v0 = vsel %vm772_vm3, %v1722_v63, 0  ;;  %v3740_v33 = vld [vmem:[%s4722_s6 + $0x30] sm:$0xff]  }
 0xfc3   :  { %v2356_v39 = vsel %vm772_vm3, %v1721_v35, 0  ;;  %v2183_v43 = vpop.xlane.xlu0 %2182  ;;  %3563 = vmatmul.mubr.msk.bf16.vlgmr.msra.gmra.mrb[68].mxu1 %vm672_vm4, %v2207_v36 }
 0xfc4   :  { %3830 = vrcp.f32 %v2183_v43  ;;  %3573 = vmatpush3.bf16.msra.mxu1 %v2356_v39  ;;  %v1710_v27 = vpop.permute.xlu1 %1709  ;;  %3574 = vmatprep.mubr.msk.bf16.mxu1 %vm3862_vm1, %v3859_v46 }
 0xfc5   :  { %3584 = vmatprep.subr.bf16.mxu1 %v3859_v46  ;;  %v1723_v53 = vpack.c.bf16 %v1710_v27, %v1710_v27  ;;  %3832 = vrcp.f32 %v2180_v31 }
 0xfc6   :  { %v3827_v44 = vpop.eup %3826 }
 0xfc7   :  { %v2201_v47 = vmul.f32 %v3827_v44, %v3813_v13  ;;  %v2186_v48 = vpop.xlane.xlu0 %2185  ;;  %v2448_v22 = vsel %vm772_vm3, %v1723_v53, 0  ;;  %v3829_v55 = vpop.eup %3828  ;;  %v3741_v53 = vld [vmem:[%s4722_s6 + $0x38] sm:$0xff]  }
 0xfc8   :  { %v1713_v49 = vpop.permute.xlu1 %1712  ;;  %v2200_v52 = vmul.f32 %v3829_v55, %v4501_v8 }
 0xfc9   :  { %v2209_v50 = vpack.c.bf16 %v2201_v47, %v2201_v47  ;;  %v1724_v14 = vpack.c.bf16 %v1713_v49, %v1713_v49 }
 0xfca   :  { %v2208_v5 = vpack.c.bf16 %v2200_v52, %v2200_v52 }
 0xfcb   :  { %v2189_v34 = vpop.xlane.xlu0 %2188  ;;  %3575 = vmatmul.mubr.msk.bf16.vlgmr.msra.gmra.mrb[72].mxu1 %vm672_vm4, %v2209_v50  ;;  %v2494_v12 = vsel %vm772_vm3, %v1724_v14, 0  ;;  %v3198_v14 = vld [vmem:[%s4723_s7 + $0x1] ss:$0 sm:$0xff] }
 0xfcc   :  { %3834 = vrcp.f32 %v2189_v34  ;;  %3585 = vmatpush3.bf16.msra.mxu1 %v2448_v22  ;;  %v1716_v54 = vpop.permute.xlu1 %1715  ;;  %3586 = vmatprep.mubr.msk.bf16.mxu1 %vm3862_vm1, %v3859_v46 }
 0xfcd   :  { %3596 = vmatprep.subr.bf16.mxu1 %v3859_v46  ;;  %v1725_v51 = vpack.c.bf16 %v1716_v54, %v1716_v54  ;;  %3836 = vrcp.f32 %v2186_v48 }
 0xfce   :  { %v3831_v56 = vpop.eup %3830 }
 0xfcf   :  { %v2203_v57 = vmul.f32 %v3831_v56, %v3817_v18  ;;  %v1703_v59 = vpop.permute.xlu0 %1702  ;;  %v2540_v4 = vsel %vm772_vm3, %v1725_v51, 0  ;;  %v3833_v6 = vpop.eup %3832 }
 0xfd0   :  { %v1720_v60 = vpack.c.bf16 %v1703_v59, %v1703_v59  ;;  %v2202_v8 = vmul.f32 %v3833_v6, %v4506_v41 }
 0xfd1   :  { %v2211_v61 = vpack.c.bf16 %v2203_v57, %v2203_v57 }
 0xfd2   :  { %v2310_v62 = vsel %vm772_vm3, %v1720_v60, 0  ;;  %v2210_v9 = vpack.c.bf16 %v2202_v8, %v2202_v8 }
 0xfd3   :  { %3567 = vmatpush3.bf16.msra.mxu0 %v2310_v62  ;;  %3587 = vmatmul.mubr.msk.bf16.vlgmr.msra.gmra.mrb[76].mxu1 %vm672_vm4, %v2211_v61 }
 0xfd4   :  { %3597 = vmatpush3.bf16.msra.mxu1 %v2540_v4  ;;  %3578 = vmatprep.subr.bf16.mxu0 %v3859_v46 }
 0xfd5   :  { %3598 = vmatprep.mubr.msk.bf16.mxu1 %vm3862_vm1, %v3859_v46  ;;  %3614 = vmatprep.subr.bf16.mxu1 %v3859_v46 }
 0xfd6   :  { %v3835_v58 = vpop.eup %3834  ;;  %3569 = vmatmul.mubr.msk.bf16.vlgmr.msra.gmra.mrb[52].mxu0 %vm672_vm4, %v2208_v5 }
 0xfd7   :  { %v2205_v7 = vmul.f32 %v3835_v58, %v4517_v37  ;;  %3579 = vmatpush3.bf16.msra.mxu0 %v2402_v0  ;;  %3580 = vmatprep.mubr.msk.bf16.mxu0 %vm3862_vm1, %v3859_v46  ;;  %v3837_v10 = vpop.eup %3836 }
 0xfd8   :  { %3590 = vmatprep.subr.bf16.mxu0 %v3859_v46  ;;  %v2204_v13 = vmul.f32 %v3837_v10, %v4513_v20 }
 0xfd9   :  { %v2213_v1 = vpack.c.bf16 %v2205_v7, %v2205_v7 }
 0xfda   :  { %v2212_v42 = vpack.c.bf16 %v2204_v13, %v2204_v13 }
 0xfdb   :  { %3599 = vmatmul.mubr.msk.bf16.vlgmr.msra.gmra.mrb[80].mxu1 %vm672_vm4, %v2213_v1 }
 0xfdc   :  { %3622 = vmatprep.mubr.msk.bf16.mxu1 %vm3862_vm1, %v3859_v46 }
 0xfde   :  { %3581 = vmatmul.mubr.msk.bf16.vlgmr.msra.gmra.mrb[56].mxu0 %vm672_vm4, %v2210_v9 }
 0xfdf   :  { %3591 = vmatpush3.bf16.msra.mxu0 %v2494_v12  ;;  %3592 = vmatprep.mubr.msk.bf16.mxu0 %vm3862_vm1, %v3859_v46 }
 0xfe0   :  { %3602 = vmatprep.subr.bf16.mxu0 %v3859_v46 }
 0xfe6   :  { %3593 = vmatmul.mubr.msk.bf16.vlgmr.msra.gmra.mrb[60].mxu0 %vm672_vm4, %v2212_v42 }
 0xfe7   :  { %3610 = vmatprep.mubr.msk.bf16.mxu0 %vm3862_vm1, %v3859_v46  ;;  %3603 = vmatpush3.bf16.msra.mxu0 %v3738_v23 }
 0xfe8   :  { %3604 = vmatprep.subr.bf16.mxu0 %v3859_v46 }
 0xfeb   :  { %3605 = vmatpush3.bf16.msra.mxu0 %v3739_v25  ;;  %v3743_v25 = vld [vmem:[%s4724_s10 + $0x28] sm:$0xff]  }
 0xfec   :  { %3606 = vmatprep.subr.bf16.mxu0 %v3859_v46 }
 0xfef   :  { %3607 = vmatpush3.bf16.msra.mxu0 %v3740_v33 }
 0xff0   :  { %3608 = vmatprep.subr.bf16.mxu0 %v3859_v46 }
 0xff3   :  { %3609 = vmatpush3.bf16.msra.mxu0 %v3741_v53 }
 0xff4   :  { %3626 = vmatprep.subr.bf16.mxu0 %v3859_v46 }
0x103d   :  { %v2254_v41 = vpop.f32.mrb[48].mxu0 }
0x103e   :  { %v3558_v45 = vpop.f32.mrb[49].mxu0 }
0x103f   :  { %v2257_v11 = vpop.f32.mrb[50].mxu0 }
0x1040   :  { %v3559_v15 = vpop.f32.mrb[51].mxu0 }
0x1096   :  { %v2300_v16 = vpop.f32.mrb[68].mxu1 }
0x1097   :  { %v3564_v17 = vpop.f32.mrb[69].mxu1 }
0x1098   :  { %v2303_v18 = vpop.f32.mrb[70].mxu1 }
0x1099   :  { %v3565_v19 = vpop.f32.mrb[71].mxu1 }
0x109e   :  { %v2392_v21 = vpop.f32.mrb[72].mxu1 }
0x109f   :  { %v3576_v37 = vpop.f32.mrb[73].mxu1 }
0x10a0   :  { %v2395_v38 = vpop.f32.mrb[74].mxu1 }
0x10a1   :  { %v3577_v20 = vpop.f32.mrb[75].mxu1 }
0x10a6   :  { %v2484_v24 = vpop.f32.mrb[76].mxu1 }
0x10a7   :  { %v3683_v26 = vpack.i.bf16 %v2484_v24, %v2300_v16  ;;  %v3588_v28 = vpop.f32.mrb[77].mxu1 }
0x10a8   :  { %v2487_v29 = vpop.f32.mrb[78].mxu1  ;;  %v3745_v28 = vld [vmem:[%s4724_s10 + $0x38] sm:$0xff]  }
0x10a9   :  { %3684 = vrot.lane.b32.xlu1 %v3683_v26, %s3866_s4  ;;  %v2346_v30 = vpop.f32.mrb[52].mxu0  ;;  %v3589_v31 = vpop.f32.mrb[79].mxu1  ;;  %s4745_s4 = smov 48   ;;  %v3744_v26 = vld [vmem:[%s4724_s10 + $0x30] sm:$0xff]  }
0x10aa   :  { %v3570_v32 = vpop.f32.mrb[53].mxu0 }
0x10ab   :  { %v2349_v40 = vpop.f32.mrb[54].mxu0 }
0x10ac   :  { %v3571_v35 = vpop.f32.mrb[55].mxu0 }
0x10ae   :  { %v2576_v36 = vpop.f32.mrb[80].mxu1 }
0x10af   :  { %v3693_v39 = vpack.i.bf16 %v2576_v36, %v2392_v21  ;;  %v3600_v43 = vpop.f32.mrb[81].mxu1 }
0x10b0   :  { %v2579_v27 = vpop.f32.mrb[82].mxu1 }
0x10b1   :  { %3694 = vrot.lane.b32.xlu1 %v3693_v39, %s4745_s4  ;;  %v2438_v44 = vpop.f32.mrb[56].mxu0  ;;  %v3601_v47 = vpop.f32.mrb[83].mxu1  ;;  %v3206_v39 = vld [vmem:[%s4725_s8 + $0x1] ss:$0 sm:$0xff] }
0x10b2   :  { %v3582_v48 = vpop.f32.mrb[57].mxu0  ;;  %v3207_v47 = vld [vmem:[%s4726_s9 + $0x1] ss:$0 sm:$0xff] }
0x10b3   :  { %v2441_v49 = vpop.f32.mrb[58].mxu0 }
0x10b4   :  { %v3583_v50 = vpop.f32.mrb[59].mxu0 }
0x10b9   :  { %v2530_v22 = vpop.f32.mrb[60].mxu0 }
0x10ba   :  { %v3688_v34 = vpack.i.bf16 %v2530_v22, %v2346_v30  ;;  %v3594_v54 = vpop.f32.mrb[61].mxu0  ;;  %v3746_v22 = vld [vmem:[%s4727_s12 + $0x40] sm:$0xff]  }
0x10bb   :  { %v2533_v55 = vpop.f32.mrb[62].mxu0  ;;  %v3748_v54 = vld [vmem:[%s4727_s12 + $0x50] sm:$0xff]  }
0x10bc   :  { %3689 = vrot.lane.b32.xlu0 %v3688_v34, %s4746_s23  ;;  %v3595_v56 = vpop.f32.mrb[63].mxu0  ;;  %v3747_v34 = vld [vmem:[%s4727_s12 + $0x48] sm:$0xff]   ;;  %v3749_v55 = vld [vmem:[%s4727_s12 + $0x58] sm:$0xff]  }
0x10bd   :  { %v3750_v56 = vld [vmem:[%s4727_s12 + $0x60] sm:$0xff]  }
0x111b   :  { %v3685_v57 = vpop.permute.xlu1 %3684 }
0x111c   :  { %v3687_v51 = vunpack.i.h.bf16 %v3685_v57  ;;  %v3686_v59 = vunpack.i.l.bf16 %v3685_v57  ;;  %v3751_v57 = vld [vmem:[%s4727_s12 + $0x68] sm:$0xff]  }
0x111e   :  { %v2594_v63 = vsel %vm282_vm2, %v2254_v41, %v3686_v59  ;;  %v2609_v4 = vsel %vm282_vm2, %v2438_v44, %v3687_v51  ;;  %v3752_v51 = vld [vmem:[%s4727_s12 + $0x70] sm:$0xff]   ;;  %v3753_v59 = vld [vmem:[%s4727_s12 + $0x78] sm:$0xff]  }
0x1123   :  { %v3695_v52 = vpop.permute.xlu1 %3694 }
0x1124   :  { %v3697_v5 = vunpack.i.h.bf16 %v3695_v52  ;;  %v3696_v6 = vunpack.i.l.bf16 %v3695_v52  ;;  %v3217_v52 = vld [vmem:[%s4728_s11 + $0x1] ss:$0 sm:$0xff] }
0x112e   :  { %v3690_v60 = vpop.permute.xlu0 %3689 }
0x112f   :  { %v3692_v61 = vunpack.i.h.bf16 %v3690_v60  ;;  %v3691_v62 = vunpack.i.l.bf16 %v3690_v60 }
0x1131   :  { %v2610_v58 = vsel %vm1151_vm5, %v2609_v4, %v3692_v61  ;;  %v2595_v0 = vsel %vm1151_vm5, %v2594_v63, %v3691_v62 }
0x1132   :  { %v2611_v7 = vsel %vm1153_vm6, %v2610_v58, %v3697_v5  ;;  %v2596_v8 = vsel %vm1153_vm6, %v2595_v0, %v3696_v6 }
0x1133   :  { %v2621_v1 = vpack.c.bf16 %v2611_v7, %v2596_v8 }
0x1135   :  { %3611 = vmatmul.mubr.msk.bf16.vlgmr.msra.gmra.mrb[64].mxu0 %vm72_vm0, %v2621_v1 }
0x1136   :  { %3642 = vmatprep.mubr.msk.bf16.mxu0 %vm3862_vm1, %v3859_v46  ;;  %3627 = vmatpush3.bf16.msra.mxu0 %v3746_v22 }
0x1137   :  { %3628 = vmatprep.subr.bf16.mxu0 %v3859_v46 }
0x113a   :  { %3629 = vmatpush3.bf16.msra.mxu0 %v3747_v34 }
0x113b   :  { %3630 = vmatprep.subr.bf16.mxu0 %v3859_v46 }
0x113e   :  { %3631 = vmatpush3.bf16.msra.mxu0 %v3748_v54 }
0x113f   :  { %3632 = vmatprep.subr.bf16.mxu0 %v3859_v46 }
0x1142   :  { %3633 = vmatpush3.bf16.msra.mxu0 %v3749_v55  ;;  %v3251_v55 = vld [vmem:[%s4730_s14 + $0x1] ss:$0 sm:$0xff] }
0x1143   :  { %3634 = vmatprep.subr.bf16.mxu0 %v3859_v46 }
0x1146   :  { %3635 = vmatpush3.bf16.msra.mxu0 %v3750_v56 }
0x1147   :  { %3636 = vmatprep.subr.bf16.mxu0 %v3859_v46 }
0x114a   :  { %3637 = vmatpush3.bf16.msra.mxu0 %v3751_v57 }
0x114b   :  { %3638 = vmatprep.subr.bf16.mxu0 %v3859_v46 }
0x114e   :  { %3639 = vmatpush3.bf16.msra.mxu0 %v3752_v51 }
0x114f   :  { %3640 = vmatprep.subr.bf16.mxu0 %v3859_v46 }
0x1152   :  { %3641 = vmatpush3.bf16.msra.mxu0 %v3753_v59 }
0x1208   :  { %v2691_v9 = vpop.f32.mrb[64].mxu0 }
0x1209   :  { %v2692_v10 = vadd.f32 %v3198_v14, %v2691_v9  ;;  %v3612_v12 = vpop.f32.mrb[65].mxu0 }
0x120a   :  { %v2694_v13 = vpop.f32.mrb[66].mxu0 }
0x120b   :  { %v2695_v42 = vadd.f32 %v3198_v14, %v2694_v13  ;;  %v3613_v41 = vpop.f32.mrb[67].mxu0  ;;  %v2698_v45 = vadd.f32 %v2692_v10, %v4376_v2 }
0x120d   :  { %v2704_v11 = vsel %vm72_vm0, %v2698_v45, 0.0  ;;  %v2699_v15 = vadd.f32 %v2695_v42, %v4378_v3  ;;  %v3742_v3 = vld [vmem:[%s4724_s10 + $0x20] sm:$0xff]  }
0x120e   :  { %2705 = vadd.xlane.f32.xlu0 %v2704_v11  ;;  %3615 = vmatpush3.bf16.msra.mxu1 %v3742_v3 }
0x120f   :  { %v2707_v16 = vsel %vm72_vm0, %v2699_v15, 0.0  ;;  %3616 = vmatprep.subr.bf16.mxu1 %v3859_v46 }
0x1210   :  { %2708 = vadd.xlane.f32.xlu1 %v2707_v16 }
0x1212   :  { %3617 = vmatpush3.bf16.msra.mxu1 %v3743_v25 }
0x1213   :  { %3618 = vmatprep.subr.bf16.mxu1 %v3859_v46 }
0x1216   :  { %3619 = vmatpush3.bf16.msra.mxu1 %v3744_v26 }
0x1217   :  { %3620 = vmatprep.subr.bf16.mxu1 %v3859_v46 }
0x121a   :  { %3621 = vmatpush3.bf16.msra.mxu1 %v3745_v28 }
0x121b   :  { %3646 = vmatprep.subr.bf16.mxu1 %v3859_v46 }
0x129b   :  { %v2706_v17 = vpop.xlane.xlu0 %2705 }
0x129c   :  { %v2710_v18 = vmul.f32 0.015625, %v2706_v17 }
0x129d   :  { %v2709_v19 = vpop.xlane.xlu1 %2708 }
0x129e   :  { %v2712_v21 = vsub.f32 %v2698_v45, %v2710_v18  ;;  %v2711_v37 = vmul.f32 0.015625, %v2709_v19  ;;  %v3240_v19 = vld [vmem:[%s4729_s13 + $0x1] ss:$0 sm:$0xff] }
0x12a0   :  { %v2713_v38 = vsub.f32 %v2699_v15, %v2711_v37  ;;  %v2714_v20 = vmul.f32 %v2712_v21, %v2712_v21 }
0x12a2   :  { %v2716_v23 = vsel %vm72_vm0, %v2714_v20, 0.0  ;;  %v2715_v24 = vmul.f32 %v2713_v38, %v2713_v38 }
0x12a3   :  { %2717 = vadd.xlane.f32.xlu0 %v2716_v23 }
0x12a4   :  { %v2719_v2 = vsel %vm72_vm0, %v2715_v24, 0.0 }
0x12a7   :  { %2720 = vadd.xlane.f32.xlu0 %v2719_v2 }
0x1330   :  { %v2718_v29 = vpop.xlane.xlu0 %2717 }
0x1331   :  { %v2722_v30 = vmul.f32 0.015625, %v2718_v29 }
0x1333   :  { %v2724_v31 = vadd.f32 1e-12, %v2722_v30 }
0x1334   :  { %v2721_v32 = vpop.xlane.xlu0 %2720 }
0x1335   :  { %3838 = vrsqrt.f32 %v2724_v31  ;;  %v2723_v33 = vmul.f32 0.015625, %v2721_v32 }
0x1337   :  { %v2725_v40 = vadd.f32 1e-12, %v2723_v33 }
0x1339   :  { %3840 = vrsqrt.f32 %v2725_v40 }
0x133f   :  { %v3839_v35 = vpop.eup %3838 }
0x1340   :  { %v2728_v36 = vmul.f32 %v3839_v35, %v2712_v21 }
0x1342   :  { %v2736_v27 = vmul.f32 %v3206_v39, %v2728_v36 }
0x1343   :  { %v3841_v43 = vpop.eup %3840 }
0x1344   :  { %v2729_v44 = vmul.f32 %v3841_v43, %v2713_v38  ;;  %v4633_v48 = vadd.f32 %v3207_v47, %v2736_v27  ;;  %v3754_v43 = vld [vmem:[%s4732_s16] sm:$0xff]   ;;  %v3755_v27 = vld [vmem:[%s4732_s16 + $0x8] sm:$0xff]  }
0x1346   :  { %v2737_v53 = vmul.f32 %v3206_v39, %v2729_v44  ;;  %v3756_v44 = vld [vmem:[%s4732_s16 + $0x10] sm:$0xff]  }
0x1348   :  { %v4635_v49 = vadd.f32 %v3207_v47, %v2737_v53  ;;  %v3757_v47 = vld [vmem:[%s4732_s16 + $0x18] sm:$0xff]  }
0x134a   :  { %v2755_v50 = vpack.c.bf16 %v4635_v49, %v4633_v48 }
0x134c   :  { %3623 = vmatmul.mubr.msk.bf16.vlgmr.msra.gmra.mrb[84].mxu1 %vm72_vm0, %v2755_v50 }
0x134d   :  { %3654 = vmatprep.mubr.msk.bf16.mxu1 %vm3862_vm1, %v3859_v46  ;;  %3647 = vmatpush3.bf16.msra.mxu1 %v3754_v43 }
0x134e   :  { %3648 = vmatprep.subr.bf16.mxu1 %v3859_v46 }
0x1351   :  { %3649 = vmatpush3.bf16.msra.mxu1 %v3755_v27 }
0x1352   :  { %3650 = vmatprep.subr.bf16.mxu1 %v3859_v46 }
0x1355   :  { %3651 = vmatpush3.bf16.msra.mxu1 %v3756_v44 }
0x1356   :  { %3652 = vmatprep.subr.bf16.mxu1 %v3859_v46  ;;  %v3252_v46 = vld [vmem:[%s4731_s15 + $0x1] ss:$0 sm:$0xff] }
0x1359   :  { %3653 = vmatpush3.bf16.msra.mxu1 %v3757_v47 }
0x141f   :  { %v2825_v60 = vpop.f32.mrb[84].mxu1 }
0x1420   :  { %v2826_v61 = vadd.f32 %v3217_v52, %v2825_v60  ;;  %v3624_v62 = vpop.f32.mrb[85].mxu1 }
0x1421   :  { %v2828_v63 = vpop.f32.mrb[86].mxu1 }
0x1422   :  { %v2834_v4 = vmul.f32 0.044715, %v2826_v61  ;;  %v2829_v5 = vadd.f32 %v3217_v52, %v2828_v63  ;;  %v3625_v6 = vpop.f32.mrb[87].mxu1  ;;  %v2832_v45 = vmul.f32 0.5, %v2826_v61  ;;  %v3253_v63 = vld [vmem:[%s4733_s17] ss:$0 sm:$0xff] }
0x1424   :  { %v2836_v58 = vmul.f32 %v2834_v4, %v2826_v61  ;;  %v2835_v0 = vmul.f32 0.044715, %v2829_v5  ;;  %v2833_v11 = vmul.f32 0.5, %v2829_v5 }
0x1426   :  { %v2838_v7 = vmul.f32 %v2836_v58, %v2826_v61  ;;  %v2837_v8 = vmul.f32 %v2835_v0, %v2829_v5 }
0x1428   :  { %v2840_v1 = vadd.f32 %v2838_v7, %v2826_v61  ;;  %v2839_v14 = vmul.f32 %v2837_v8, %v2829_v5 }
0x142a   :  { %v2842_v9 = vmul.f32 0.7978846, %v2840_v1  ;;  %v2841_v10 = vadd.f32 %v2839_v14, %v2829_v5 }
0x142c   :  { %3842 = vtanh.f32 %v2842_v9  ;;  %v2843_v12 = vmul.f32 0.7978846, %v2841_v10 }
0x142e   :  { %3844 = vtanh.f32 %v2843_v12 }
0x1436   :  { %v3843_v13 = vpop.eup %3842 }
0x1437   :  { %v2846_v42 = vadd.f32 1.0, %v3843_v13 }
0x1438   :  { %v3845_v41 = vpop.eup %3844 }
0x1439   :  { %v2847_v15 = vadd.f32 1.0, %v3845_v41  ;;  %v2848_v16 = vmul.f32 %v2846_v42, %v2832_v45 }
0x143b   :  { %v2849_v17 = vmul.f32 %v2847_v15, %v2833_v11 }
0x143d   :  { %v2867_v18 = vpack.c.bf16 %v2849_v17, %v2848_v16 }
0x143f   :  { %3643 = vmatmul.mubr.bf16.vlgmr.msra.gmra.mrb[68].mxu0 %v2867_v18 }
0x1512   :  { %v2958_v21 = vpop.f32.mrb[68].mxu0 }
0x1513   :  { %v2959_v37 = vadd.f32 %v3240_v19, %v2958_v21  ;;  %v3644_v38 = vpop.f32.mrb[69].mxu0 }
0x1514   :  { %v2961_v20 = vpop.f32.mrb[70].mxu0 }
0x1515   :  { %v2962_v23 = vadd.f32 %v3240_v19, %v2961_v20  ;;  %v3645_v24 = vpop.f32.mrb[71].mxu0  ;;  %v2965_v2 = vadd.f32 %v2959_v37, %v4633_v48 }
0x1517   :  { %v2971_v3 = vsel %vm72_vm0, %v2965_v2, 0.0  ;;  %v2966_v25 = vadd.f32 %v2962_v23, %v4635_v49 }
0x1518   :  { %2972 = vadd.xlane.f32.xlu0 %v2971_v3 }
0x1519   :  { %v2974_v26 = vsel %vm72_vm0, %v2966_v25, 0.0 }
0x151a   :  { %2975 = vadd.xlane.f32.xlu1 %v2974_v26 }
0x15a5   :  { %v2973_v28 = vpop.xlane.xlu0 %2972 }
0x15a6   :  { %v2977_v29 = vmul.f32 0.015625, %v2973_v28 }
0x15a7   :  { %v2976_v30 = vpop.xlane.xlu1 %2975 }
0x15a8   :  { %v2979_v31 = vsub.f32 %v2965_v2, %v2977_v29  ;;  %v2978_v32 = vmul.f32 0.015625, %v2976_v30 }
0x15aa   :  { %v2980_v33 = vsub.f32 %v2966_v25, %v2978_v32  ;;  %v2981_v40 = vmul.f32 %v2979_v31, %v2979_v31 }
0x15ac   :  { %v2983_v35 = vsel %vm72_vm0, %v2981_v40, 0.0  ;;  %v2982_v36 = vmul.f32 %v2980_v33, %v2980_v33 }
0x15ad   :  { %2984 = vadd.xlane.f32.xlu0 %v2983_v35 }
0x15ae   :  { %v2986_v39 = vsel %vm72_vm0, %v2982_v36, 0.0 }
0x15af   :  { %2987 = vadd.xlane.f32.xlu1 %v2986_v39 }
0x163a   :  { %v2985_v53 = vpop.xlane.xlu0 %2984 }
0x163b   :  { %v2989_v48 = vmul.f32 0.015625, %v2985_v53 }
0x163c   :  { %v2988_v49 = vpop.xlane.xlu1 %2987 }
0x163d   :  { %v2991_v50 = vadd.f32 1e-12, %v2989_v48  ;;  %v2990_v22 = vmul.f32 0.015625, %v2988_v49 }
0x163f   :  { %3846 = vrsqrt.f32 %v2991_v50  ;;  %v2992_v34 = vadd.f32 1e-12, %v2990_v22 }
0x1641   :  { %3848 = vrsqrt.f32 %v2992_v34 }
0x1649   :  { %v3847_v54 = vpop.eup %3846 }
0x164a   :  { %v2995_v56 = vmul.f32 %v3847_v54, %v2979_v31 }
0x164b   :  { %v3849_v57 = vpop.eup %3848 }
0x164c   :  { %v3003_v51 = vmul.f32 %v3251_v55, %v2995_v56  ;;  %v2996_v59 = vmul.f32 %v3849_v57, %v2980_v33 }
0x164e   :  { %v3004_v52 = vmul.f32 %v3251_v55, %v2996_v59  ;;  %v3011_v60 = vadd.f32 %v3252_v46, %v3003_v51 }
0x1650   :  { %v3012_v61 = vadd.f32 %v3252_v46, %v3004_v52 }
0x1652   :  { %v3021_v62 = vpack.c.bf16 %v3012_v61, %v3011_v60 }
0x1654   :  { %3655 = vmatmul.mubr.msk.bf16.vlgmr.msra.gmra.mrb[88].mxu1 %vm72_vm0, %v3021_v62 }
0x1727   :  { %v3090_v4 = vpop.f32.mrb[88].mxu1 }
0x1728   :  { %v3091_v5 = vadd.f32 %v3253_v63, %v3090_v4  ;;  %v3656_v6 = vpop.f32.mrb[89].mxu1 }
0x1729   :  { %v3093_v58 = vpop.f32.mrb[90].mxu1 }
0x172a   :  { %3097 = vst [vmem:[%s4734_s18] sm:$0xff] %v3091_v5  ;;  %v3094_v0 = vadd.f32 %v3253_v63, %v3093_v58  ;;  %v3657_v7 = vpop.f32.mrb[91].mxu1 }
0x172c   :  { %3098 = vst [vmem:[%s4734_s18 + $0x8] sm:$0xff] %v3094_v0 }

</bundles_post_ra>
